<compile_context>
chip_gen: v5e
topology: v5e:2x2
jax: 0.10.0
libtpu: 0.0.40
codegen_flags: <defaults>
</compile_context>

<pallas_src>
import functools

import numpy as np
import jax
import jax.numpy as jnp
from jax.experimental import pallas as pl
from jax.experimental.pallas import tpu as pltpu


_LANES = 128              # lane-dense slab width (TPU lane dimension)
_TILE_N = 128             # points per grid step (multiple of 8)
_COUNT_COL = _LANES - 1   # slab column carrying the per-point "1" (pillar counts)


def _round_up(x, m):
    return (x + m - 1) // m * m


# --------------------------------------------------------------------------- #
# Phase 1: per-pillar sums -> means (reduction over point tiles).              #
# --------------------------------------------------------------------------- #
def _pillar_mean_kernel(inv_ref, slab_ref, means_ref):
    step = pl.program_id(0)

    @pl.when(step == 0)
    def _init():
        means_ref[...] = jnp.zeros_like(means_ref)

    tile_n = slab_ref.shape[0]
    p_pad = means_ref.shape[0]

    inv = inv_ref[...]                                              # (tile_n, 1) i32
    # One-hot built in-kernel (never touches HBM).  Padded points carry inv == -1
    # and therefore an all-zero row.
    onehot = jnp.where(
        jax.lax.broadcasted_iota(jnp.int32, (tile_n, p_pad), 1) == inv, 1.0, 0.0)

    # scatter-add of every slab column (xyz copies, feats, count) via the MXU;
    # contraction over the point axis -- no explicit transpose materialized.
    means_ref[...] += jax.lax.dot_general(
        onehot, slab_ref[...],
        dimension_numbers=(((0,), (0,)), ((), ())),
        preferred_element_type=jnp.float32)                         # (p_pad, 128)

    @pl.when(step == pl.num_programs(0) - 1)
    def _finalize():
        sums = means_ref[...]
        counts = jnp.maximum(sums[:, _COUNT_COL:_COUNT_COL + 1], 1.0)
        means_ref[...] = sums / counts


def _pillar_means(inv_pad, slab, p_pad, tile_n):
    n_pad = slab.shape[0]
    return pl.pallas_call(
        _pillar_mean_kernel,
        out_shape=jax.ShapeDtypeStruct((p_pad, _LANES), jnp.float32),
        grid_spec=pltpu.PrefetchScalarGridSpec(
            num_scalar_prefetch=0,
            grid=(n_pad // tile_n,),
            in_specs=[
                pl.BlockSpec((tile_n, 1), lambda i: (i, 0)),        # unq_inv
                pl.BlockSpec((tile_n, _LANES), lambda i: (i, 0)),   # point slab
            ],
            out_specs=pl.BlockSpec((p_pad, _LANES), lambda i: (0, 0)),  # resident acc
        ),
        compiler_params=pltpu.CompilerParams(
            dimension_semantics=("arbitrary",),                     # reduction axis
            vmem_limit_bytes=32 * 1024 * 1024),
    )(inv_pad, slab)


# --------------------------------------------------------------------------- #
# Phase 2: per-point features (parallel over point tiles).                     #
# --------------------------------------------------------------------------- #
def _pillar_feature_kernel(d_feat, inv_ref, slab_ref, means_ref, const_ref, out_ref):
    tile_n, n_lanes = slab_ref.shape
    p_pad = means_ref.shape[0]

    inv = inv_ref[...]                                              # (tile_n, 1) i32
    slab = slab_ref[...]                                            # (tile_n, 128) f32

    # Gather per-point pillar means via MXU (== means[unq_inv]); exact because the
    # one-hot is exactly 0/1 and everything stays f32.
    onehot = jnp.where(
        jax.lax.broadcasted_iota(jnp.int32, (tile_n, p_pad), 1) == inv, 1.0, 0.0)
    pmean = jnp.dot(onehot, means_ref[...], preferred_element_type=jnp.float32)

    consts = const_ref[...]
    vs = consts[0:1, :]       # voxel size at the f_center columns, 1.0 elsewhere
    half_vs = consts[1:2, :]  # voxel_size / 2 at the f_center columns, 0 elsewhere
    pc = consts[2:3, :]       # pc_range min at the f_center columns, 0 elsewhere

    # Pillar center recomputed in-kernel from xyz; f32->i32 truncates toward zero,
    # matching torch .long().  Values outside the f_center columns are masked below.
    coords = (slab - pc) / vs
    coords_i = coords.astype(jnp.int32).astype(jnp.float32)
    center = coords_i * vs + half_vs + pc

    col = jax.lax.broadcasted_iota(jnp.int32, (tile_n, n_lanes), 1)
    feat_mask = col < d_feat
    cluster_mask = (col >= d_feat) & (col < d_feat + 3)
    center_mask = (col >= d_feat + 3) & (col < d_feat + 6)

    # One lane-dense store: [feats | f_cluster | f_center | zeros].
    out_ref[...] = (jnp.where(feat_mask, slab, 0.0)
                    + jnp.where(cluster_mask, slab - pmean, 0.0)
                    + jnp.where(center_mask, slab - center, 0.0))


def _pillar_features(inv_pad, slab, means, consts, d_feat, tile_n):
    n_pad = slab.shape[0]
    p_pad = means.shape[0]
    kernel = functools.partial(_pillar_feature_kernel, d_feat)
    return pl.pallas_call(
        kernel,
        out_shape=jax.ShapeDtypeStruct((n_pad, _LANES), jnp.float32),
        grid_spec=pltpu.PrefetchScalarGridSpec(
            num_scalar_prefetch=0,
            grid=(n_pad // tile_n,),
            in_specs=[
                pl.BlockSpec((tile_n, 1), lambda i: (i, 0)),        # unq_inv
                pl.BlockSpec((tile_n, _LANES), lambda i: (i, 0)),   # point slab
                pl.BlockSpec((p_pad, _LANES), lambda i: (0, 0)),    # pillar means
                pl.BlockSpec((8, _LANES), lambda i: (0, 0)),        # vs/pc constants
            ],
            out_specs=pl.BlockSpec((tile_n, _LANES), lambda i: (i, 0)),
        ),
        compiler_params=pltpu.CompilerParams(
            dimension_semantics=("parallel",),                      # both TCs on v7x
            vmem_limit_bytes=32 * 1024 * 1024),
    )(inv_pad, slab, means, consts)


class PillarNet:
    """JAX/Pallas re-implementation of the PyTorch PillarNet module."""

    def __init__(self, num_input_features, voxel_size, pc_range):
        self.num_input_features = num_input_features
        self.voxel_size = np.array(voxel_size, dtype=np.float64)
        self.pc_range = np.array(pc_range, dtype=np.float64)

    def forward(self, points):
        # ---- glue: data-dependent filtering / unique (dynamic shapes) ----
        # TODO(synk): dynamic boolean masking and torch.unique(return_inverse=True)
        # have no static-shape Pallas equivalent; done host-side.
        pts = np.asarray(points, dtype=np.float32)

        grid_size = (self.pc_range[3:] - self.pc_range[:3]) / self.voxel_size
        grid_size = np.round(grid_size).astype(np.int64)

        vs = self.voxel_size.astype(np.float32)
        pc = self.pc_range.astype(np.float32)

        coords = (pts[:, 1:4] - pc[:3].reshape(1, 3)) / vs.reshape(1, 3)
        mask = (
            (coords[:, 0] >= 0) & (coords[:, 0] < grid_size[0])
            & (coords[:, 1] >= 0) & (coords[:, 1] < grid_size[1])
        )
        pts = pts[mask]
        coords = coords[mask]
        coords_i = coords.astype(np.int64)          # trunc toward zero == .long()
        batch_idx = pts[:, 0:1].astype(np.int64)
        points_index = np.concatenate([batch_idx, coords_i[:, :2]], axis=1)
        unq, unq_inv = np.unique(points_index, axis=0, return_inverse=True)
        unq = unq.astype(np.int32)
        unq_inv = unq_inv.astype(np.int32)

        n = pts.shape[0]
        p = unq.shape[0]
        d_feat = pts.shape[1] - 1
        assert d_feat + 6 <= _COUNT_COL, "feature width too large for 128-lane slab"

        n_pad = max(_round_up(n, _TILE_N), _TILE_N)
        p_pad = max(_round_up(p, 128), 128)

        # ---- device-side input prep (no (N, P) one-hot, int32 unq_inv) ----
        feats = jnp.asarray(pts[:, 1:])                              # (n, d_feat)
        inv = jnp.asarray(unq_inv)                                   # (n,) int32

        slab = jnp.zeros((n_pad, _LANES), jnp.float32)
        slab = slab.at[:n, :d_feat].set(feats)                       # raw features
        slab = slab.at[:n, d_feat:d_feat + 3].set(feats[:, :3])      # xyz @ f_cluster cols
        slab = slab.at[:n, d_feat + 3:d_feat + 6].set(feats[:, :3])  # xyz @ f_center cols
        slab = slab.at[:n, _COUNT_COL].set(1.0)                      # per-point count

        inv_pad = jnp.full((n_pad, 1), -1, dtype=jnp.int32).at[:n, 0].set(inv)

        consts = np.zeros((8, _LANES), np.float32)
        consts[0, :] = 1.0
        consts[0, d_feat + 3:d_feat + 6] = vs[:3]
        consts[1, d_feat + 3:d_feat + 6] = vs[:3] / 2.0
        consts[2, d_feat + 3:d_feat + 6] = pc[:3]
        consts = jnp.asarray(consts)

        # ---- hot path: Pallas kernels ----
        means = _pillar_means(inv_pad, slab, p_pad, _TILE_N)
        out_slab = _pillar_features(inv_pad, slab, means, consts, d_feat, _TILE_N)
        features = out_slab[:n, :d_feat + 6]

        return (features,
                jnp.asarray(unq[:, [0, 2, 1]]),
                jnp.asarray(unq_inv),
                jnp.asarray(grid_size[[1, 0]].astype(np.int32)))


def _reference_numpy(points_np, voxel_size, pc_range):
    vs = np.array(voxel_size, dtype=np.float32)
    pc = np.array(pc_range, dtype=np.float32)
    grid = np.round((np.array(pc_range)[3:] - np.array(pc_range)[:3])
                    / np.array(voxel_size)).astype(np.int64)
    coords = (points_np[:, 1:4] - pc[:3]) / vs
    mask = ((coords[:, 0] >= 0) & (coords[:, 0] < grid[0])
            & (coords[:, 1] >= 0) & (coords[:, 1] < grid[1]))
    pts = points_np[mask]
    coords = coords[mask]
    ci = coords.astype(np.int64)
    idx = np.concatenate([pts[:, 0:1].astype(np.int64), ci[:, :2]], axis=1)
    unq, inv = np.unique(idx, axis=0, return_inverse=True)
    sums = np.zeros((unq.shape[0], 3), np.float32)
    cnt = np.zeros((unq.shape[0], 1), np.float32)
    np.add.at(sums, inv, pts[:, 1:4])
    np.add.at(cnt, inv, 1.0)
    means = sums / cnt
    f_cluster = pts[:, 1:4] - means[inv]
    f_center = pts[:, 1:4] - (ci.astype(np.float32) * vs + vs / 2 + pc[:3])
    feats = np.concatenate([pts[:, 1:], f_cluster, f_center], axis=-1)
    return feats, unq[:, [0, 2, 1]].astype(np.int32), inv, grid[[1, 0]]


if __name__ == "__main__":
    key = jax.random.PRNGKey(0)
    n_points = 512
    kb, kx, ky, kz, ki = jax.random.split(key, 5)
    batch = jax.random.randint(kb, (n_points, 1), 0, 2).astype(jnp.float32)
    x = jax.random.uniform(kx, (n_points, 1), minval=-1.0, maxval=9.0)
    y = jax.random.uniform(ky, (n_points, 1), minval=-1.0, maxval=9.0)
    z = jax.random.uniform(kz, (n_points, 1), minval=-2.0, maxval=2.0)
    intensity = jax.random.uniform(ki, (n_points, 1))
    points = jnp.concatenate([batch, x, y, z, intensity], axis=-1)   # (N, 5)

    voxel_size = [0.5, 0.5, 4.0]
    pc_range = [0.0, 0.0, -2.0, 8.0, 8.0, 2.0]

    net = PillarNet(num_input_features=5, voxel_size=voxel_size, pc_range=pc_range)
    features, unq, unq_inv, grid_size = net.forward(points)
    features = jax.block_until_ready(features)

    # sanity check against a pure-numpy reference
    ref_feats, ref_unq, ref_inv, ref_grid = _reference_numpy(
        np.asarray(points, dtype=np.float32), voxel_size, pc_range)
    np.testing.assert_allclose(np.asarray(features), ref_feats, rtol=1e-4, atol=1e-4)
    np.testing.assert_array_equal(np.asarray(unq), ref_unq)
    np.testing.assert_array_equal(np.asarray(unq_inv), ref_inv)
    np.testing.assert_array_equal(np.asarray(grid_size), ref_grid)

    print("KERNEL_OK")
</pallas_src>

<mosaic_0001>
module attributes {stable_mosaic.version = 11 : i64} {
  func.func @_pillar_mean_kernel(%arg0: i32, %arg1: memref<128x1xi32, #tpu.memory_space<vmem>>, %arg2: memref<128x128xf32, #tpu.memory_space<vmem>>, %arg3: memref<256x128xf32, #tpu.memory_space<vmem>>) attributes {dimension_semantics = [#tpu.dimension_semantics<arbitrary>], iteration_bounds = array<i64: 3>, scalar_prefetch = 0 : i64, scratch_operands = 0 : i64, tpu.core_type = #tpu.core_type<tc>, window_params = [{transform_indices = @transform_0, window_bounds = array<i64: 128, 1>}, {transform_indices = @transform_1, window_bounds = array<i64: 128, 128>}, {pipeline_mode = #tpu.pipeline_mode<synchronous>, transform_indices = @transform_2, window_bounds = array<i64: 256, 128>}]} {
    %c0_i32 = arith.constant 0 : i32
    %0 = arith.cmpi eq, %arg0, %c0_i32 : i32
    %1 = arith.extui %0 : i1 to i32
    %c0_i32_0 = arith.constant 0 : i32
    %2 = arith.cmpi ne, %1, %c0_i32_0 : i32
    scf.if %2 {
      %cst_11 = arith.constant 0.000000e+00 : f32
      %18 = vector.broadcast %cst_11 : f32 to vector<256x128xf32>
      %c0_12 = arith.constant 0 : index
      %c0_13 = arith.constant 0 : index
      %19 = vector.load %arg3[%c0_12, %c0_13] : memref<256x128xf32, #tpu.memory_space<vmem>>, vector<256x128xf32>
      tpu.vector_store %arg3[%c0_12, %c0_13], %18 {strides = array<i32>} : memref<256x128xf32, #tpu.memory_space<vmem>>, vector<256x128xf32>,
    } else {
    }
    %c0 = arith.constant 0 : index
    %c0_1 = arith.constant 0 : index
    %3 = vector.load %arg1[%c0, %c0_1] : memref<128x1xi32, #tpu.memory_space<vmem>>, vector<128x1xi32>
    %4 = tpu.iota {dimensions = array<i32: 1>} : vector<128x256xi32>
    %5 = vector.broadcast %3 : vector<128x1xi32> to vector<128x256xi32>
    %6 = arith.cmpi eq, %4, %5 : vector<128x256xi32>
    %cst = arith.constant 1.000000e+00 : f32
    %cst_2 = arith.constant 0.000000e+00 : f32
    %7 = vector.broadcast %cst : f32 to vector<128x256xf32>
    %8 = vector.broadcast %cst_2 : f32 to vector<128x256xf32>
    %9 = arith.select %6, %7, %8 : vector<128x256xi1>, vector<128x256xf32>
    %c0_3 = arith.constant 0 : index
    %c0_4 = arith.constant 0 : index
    %10 = vector.load %arg3[%c0_3, %c0_4] : memref<256x128xf32, #tpu.memory_space<vmem>>, vector<256x128xf32>
    %c0_5 = arith.constant 0 : index
    %c0_6 = arith.constant 0 : index
    %11 = vector.load %arg2[%c0_5, %c0_6] : memref<128x128xf32, #tpu.memory_space<vmem>>, vector<128x128xf32>
    %cst_7 = arith.constant dense<0.000000e+00> : vector<256x128xf32>
    %12 = tpu.matmul %9, %11, %cst_7 {dimension_numbers = #tpu.dot_dimension_numbers<[0], [0], [1], [1], [0, 1, 1, 1], [], []>} : vector<128x256xf32>, vector<128x128xf32>, vector<256x128xf32> -> vector<256x128xf32>
    %13 = arith.addf %10, %12 : vector<256x128xf32>
    %c0_8 = arith.constant 0 : index
    %c0_9 = arith.constant 0 : index
    %14 = vector.load %arg3[%c0_8, %c0_9] : memref<256x128xf32, #tpu.memory_space<vmem>>, vector<256x128xf32>
    tpu.vector_store %arg3[%c0_8, %c0_9], %13 {strides = array<i32>} : memref<256x128xf32, #tpu.memory_space<vmem>>, vector<256x128xf32>,
    %c2_i32 = arith.constant 2 : i32
    %15 = arith.cmpi eq, %arg0, %c2_i32 : i32
    %16 = arith.extui %15 : i1 to i32
    %c0_i32_10 = arith.constant 0 : i32
    %17 = arith.cmpi ne, %16, %c0_i32_10 : i32
    scf.if %17 {
      %c0_11 = arith.constant 0 : index
      %c0_12 = arith.constant 0 : index
      %18 = vector.load %arg3[%c0_11, %c0_12] : memref<256x128xf32, #tpu.memory_space<vmem>>, vector<256x128xf32>
      %19 = vector.extract_strided_slice %18 {offsets = [0, 127], sizes = [256, 1], strides = [1, 1]} : vector<256x128xf32> to vector<256x1xf32>
      %cst_13 = arith.constant 1.000000e+00 : f32
      %20 = vector.broadcast %cst_13 : f32 to vector<256x1xf32>
      %21 = arith.maximumf %19, %20 : vector<256x1xf32>
      %22 = vector.broadcast %21 : vector<256x1xf32> to vector<256x128xf32>
      %23 = arith.divf %18, %22 : vector<256x128xf32>
      %c0_14 = arith.constant 0 : index
      %c0_15 = arith.constant 0 : index
      %24 = vector.load %arg3[%c0_14, %c0_15] : memref<256x128xf32, #tpu.memory_space<vmem>>, vector<256x128xf32>
      tpu.vector_store %arg3[%c0_14, %c0_15], %23 {strides = array<i32>} : memref<256x128xf32, #tpu.memory_space<vmem>>, vector<256x128xf32>,
    } else {
    }
    return
  }
  func.func @transform_0(%arg0: i32) -> (i32, i32) {
    %c0_i32 = arith.constant 0 : i32
    %c0_i32_0 = arith.constant 0 : i32
    return %arg0, %c0_i32 : i32, i32
  }
  func.func @transform_1(%arg0: i32) -> (i32, i32) {
    %c0_i32 = arith.constant 0 : i32
    %c0_i32_0 = arith.constant 0 : i32
    return %arg0, %c0_i32 : i32, i32
  }
  func.func @transform_2(%arg0: i32) -> (i32, i32) {
    %c0_i32 = arith.constant 0 : i32
    %c0_i32_0 = arith.constant 0 : i32
    %c0_i32_1 = arith.constant 0 : i32
    return %c0_i32, %c0_i32_0 : i32, i32
  }
}

</mosaic_0001>

<bundles_post_ra>
// kernel: tpu_custom_call.1
= control target key start
LH: loop header
LB: loop body
LE: loop exit
PB: predicated region body
PF: predicated region fallthrough
CT: control target
= control target key end

     0   :  { %7 = vsyncpa [#allocation3], 0  ;;  %s1746_s9 = smov 0   ;;  %s2371_s0 = inlined_call_operand.vmem [shape: s32[384,1], index: 0, kind: input, shape index: {}]   ;;  %s2372_s1 = inlined_call_operand.vmem [shape: f32[384,128], index: 1, kind: input, shape index: {}]   ;;  %s2373_s2 = inlined_call_operand.hbm [shape: f32[256,128], index: 2, kind: output, shape index: {}]  }
   0x1 LB: > { %s1752_s10 = sadd.s32 4294967295, %s1722_s9   ;;  %p1415_p0 = scmp.ge.s32.totalorder %s1722_s9, 1  ;;  %s1722_s9 = sphi %s1746_s9, %s13_s9  }
   0x2   : > { %p120_p1 = scmp.lt.s32.totalorder %s1722_s9, 4 }
   0x4   : > { %p121_p2 = pnand %p1415_p0, %p120_p1 }
   0x5   : > { %s1416_s11 = sshll.u32 (!%p121_p2), %s1752_s10, 4  ;;  %p1420_p4 = scmp.ne.s32.totalorder (!%p121_p2), %s1752_s10, 0 }
   0x6   : > { %124 = sbr.rel (%p121_p2) target bundleno = 827 (0x33b), region = 28  ;;  %p143_p3 = scmp.lt.s32.totalorder (!%p121_p2), %s1416_s11, 47 }
   0xb   : > { %s2405_s11 = smov (!%p143_p3, %s1416_s11), 47  ;;  %157 = sbr.rel (%p1420_p4) target bundleno = 49 (0x31), region = 32 }
   0xc   : > { %s1417_s12 = sshll.u32 %s2405_s11, 3 }
   0xd   : > { %s1760_s15 = scalar_lea.vmem %s2371_s0, %s1417_s12  ;;  %s1765_s18 = scalar_lea.vmem %s2372_s1, %s1417_s12 }
  0x10   : > { %v1724_v0 = vmov 0.0  }
  0x11   : > { %158 = vst [vmem:[#allocation2] sm:$0xff] %v1724_v0 }
  0x12   : > { %159 = vst [vmem:[#allocation2 + $0x8] sm:$0xff] %v1724_v0 }
  0x13   : > { %160 = vst [vmem:[#allocation2 + $0x10] sm:$0xff] %v1724_v0 }
  0x14   : > { %161 = vst [vmem:[#allocation2 + $0x18] sm:$0xff] %v1724_v0 }
  0x15   : > { %162 = vst [vmem:[#allocation2 + $0x20] sm:$0xff] %v1724_v0 }
  0x16   : > { %163 = vst [vmem:[#allocation2 + $0x28] sm:$0xff] %v1724_v0 }
  0x17   : > { %164 = vst [vmem:[#allocation2 + $0x30] sm:$0xff] %v1724_v0 }
  0x18   : > { %165 = vst [vmem:[#allocation2 + $0x38] sm:$0xff] %v1724_v0 }
  0x19   : > { %166 = vst [vmem:[#allocation2 + $0x40] sm:$0xff] %v1724_v0 }
  0x1a   : > { %167 = vst [vmem:[#allocation2 + $0x48] sm:$0xff] %v1724_v0 }
  0x1b   : > { %168 = vst [vmem:[#allocation2 + $0x50] sm:$0xff] %v1724_v0 }
  0x1c   : > { %169 = vst [vmem:[#allocation2 + $0x58] sm:$0xff] %v1724_v0 }
  0x1d   : > { %170 = vst [vmem:[#allocation2 + $0x60] sm:$0xff] %v1724_v0 }
  0x1e   : > { %171 = vst [vmem:[#allocation2 + $0x68] sm:$0xff] %v1724_v0 }
  0x1f   : > { %172 = vst [vmem:[#allocation2 + $0x70] sm:$0xff] %v1724_v0 }
  0x20   : > { %173 = vst [vmem:[#allocation2 + $0x78] sm:$0xff] %v1724_v0 }
  0x21   : > { %174 = vst [vmem:[#allocation2 + $0x80] sm:$0xff] %v1724_v0 }
  0x22   : > { %175 = vst [vmem:[#allocation2 + $0x88] sm:$0xff] %v1724_v0 }
  0x23   : > { %176 = vst [vmem:[#allocation2 + $0x90] sm:$0xff] %v1724_v0 }
  0x24   : > { %177 = vst [vmem:[#allocation2 + $0x98] sm:$0xff] %v1724_v0 }
  0x25   : > { %178 = vst [vmem:[#allocation2 + $0xa0] sm:$0xff] %v1724_v0 }
  0x26   : > { %179 = vst [vmem:[#allocation2 + $0xa8] sm:$0xff] %v1724_v0 }
  0x27   : > { %180 = vst [vmem:[#allocation2 + $0xb0] sm:$0xff] %v1724_v0 }
  0x28   : > { %181 = vst [vmem:[#allocation2 + $0xb8] sm:$0xff] %v1724_v0 }
  0x29   : > { %182 = vst [vmem:[#allocation2 + $0xc0] sm:$0xff] %v1724_v0 }
  0x2a   : > { %183 = vst [vmem:[#allocation2 + $0xc8] sm:$0xff] %v1724_v0 }
  0x2b   : > { %184 = vst [vmem:[#allocation2 + $0xd0] sm:$0xff] %v1724_v0 }
  0x2c   : > { %185 = vst [vmem:[#allocation2 + $0xd8] sm:$0xff] %v1724_v0 }
  0x2d   : > { %186 = vst [vmem:[#allocation2 + $0xe0] sm:$0xff] %v1724_v0 }
  0x2e   : > { %187 = vst [vmem:[#allocation2 + $0xe8] sm:$0xff] %v1724_v0 }
  0x2f   : > { %188 = vst [vmem:[#allocation2 + $0xf0] sm:$0xff] %v1724_v0 }
  0x30   : > { %189 = vst [vmem:[#allocation2 + $0xf8] sm:$0xff] %v1724_v0 }
  0x31 PF: > { %v192_v1 = vld [vmem:[%s1760_s15 + $0x10] sm:$0xff]  ;;  %v190_v2 = vld [vmem:[%s1760_s15] sm:$0xff]  ;;  %v1725_v3 = vmov 0   ;;  %v193_v5 = vld [vmem:[%s1760_s15 + $0x18] sm:$0xff]  ;;  %v206_v19 = vlaneseq  ;;  %v1726_v24 = vmov 0.0   ;;  %p1421_p5 = scmp.ne.s32.totalorder %s1752_s10, 2 }
  0x32   : > { %1496 = vset.pattern.permute.xlu1 %v1725_v3  ;;  %1495 = vset.pattern.permute.xlu0 %v1725_v3  ;;  %v194_v4 = vld [vmem:[%s1760_s15 + $0x20] sm:$0xff]  ;;  %v191_v6 = vld [vmem:[%s1760_s15 + $0x8] sm:$0xff]  ;;  %v197_v8 = vld [vmem:[%s1760_s15 + $0x38] sm:$0xff] }
  0x33   : > { %216 = vperm.xlu1 %1496, %v192_v1   ;;  %210 = vperm.xlu0 %1495, %v190_v2   ;;  %v195_v7 = vld [vmem:[%s1760_s15 + $0x28] sm:$0xff]  ;;  %v196_v9 = vld [vmem:[%s1760_s15 + $0x30] sm:$0xff]  ;;  %v198_v10 = vld [vmem:[%s1760_s15 + $0x40] sm:$0xff]  ;;  %v1788_v21 = vand.u32 127, %v206_v19 }
  0x34   : > { %1497 = vset.pattern.permute.xlu2 %v1725_v3  ;;  %v200_v11 = vld [vmem:[%s1760_s15 + $0x50] sm:$0xff]  ;;  %v199_v12 = vld [vmem:[%s1760_s15 + $0x48] sm:$0xff]  ;;  %v201_v13 = vld [vmem:[%s1760_s15 + $0x58] sm:$0xff] }
  0x35   : > { %222 = vperm.xlu2 %1497, %v194_v4   ;;  %v203_v14 = vld [vmem:[%s1760_s15 + $0x68] sm:$0xff]  ;;  %v202_v15 = vld [vmem:[%s1760_s15 + $0x60] sm:$0xff]  ;;  %v204_v16 = vld [vmem:[%s1760_s15 + $0x70] sm:$0xff]  ;;  %v1791_v22 = vadd.s32 128, %v1788_v21 }
  0x36   : > { %v205_v17 = vld [vmem:[%s1760_s15 + $0x78] sm:$0xff] }
  0x3b   : > { %219 = vperm.xlu1 %1496, %v193_v5   ;;  %213 = vperm.xlu0 %1495, %v191_v6  }
  0x3d   : > { %225 = vperm.xlu2 %1497, %v195_v7  }
  0x43   : > { %231 = vperm.xlu1 %1496, %v197_v8   ;;  %228 = vperm.xlu0 %1495, %v196_v9  }
  0x45   : > { %234 = vperm.xlu2 %1497, %v198_v10  }
  0x4b   : > { %240 = vperm.xlu1 %1496, %v200_v11   ;;  %237 = vperm.xlu0 %1495, %v199_v12  }
  0x4d   : > { %243 = vperm.xlu2 %1497, %v201_v13  }
  0x53   : > { %249 = vperm.xlu1 %1496, %v203_v14   ;;  %246 = vperm.xlu0 %1495, %v202_v15  }
  0x55   : > { %252 = vperm.xlu2 %1497, %v204_v16  }
  0x5b   : > { %255 = vperm.xlu0 %1495, %v205_v17  }
  0x8f   : > { %v1784_v18 = vpop.permute.xlu2 %222 }
  0x90   : > { %vm265_vm14 = vcmp.eq.s32.totalorder %v1788_v21, %v1784_v18  ;;  %vm266_vm15 = vcmp.eq.s32.totalorder %v1791_v22, %v1784_v18 }
  0x91   : > { %v297_v62 = vsel %vm265_vm14, 1.0, %v1726_v24  ;;  %v298_v63 = vsel %vm266_vm15, 1.0, %v1726_v24 }
  0x92   : > { %v1506_v0 = vpack.i.bf16 %v297_v62, %v298_v63 }
  0x97   : > { %v1786_v20 = vpop.permute.xlu2 %225 }
  0x9f   : > { %v235_v23 = vpop.permute.xlu2 %234 }
  0xa0   : > { %vm273_vm0 = vcmp.eq.s32.totalorder %v1788_v21, %v235_v23  ;;  %vm274_vm1 = vcmp.eq.s32.totalorder %v1791_v22, %v235_v23 }
  0xa1   : > { %v1796_v25 = vsel %vm273_vm0, 1.0, %v1726_v24  ;;  %v1799_v26 = vsel %vm274_vm1, 1.0, %v1726_v24 }
  0xa2   : > { %v1514_v27 = vpack.i.bf16 %v1796_v25, %v1799_v26  ;;  %v364_v25 = vld [vmem:[%s1765_s18 + $0x58] sm:$0xff]  ;;  %v363_v26 = vld [vmem:[%s1765_s18 + $0x50] sm:$0xff] }
  0xa5   : > { %v217_v28 = vpop.permute.xlu1 %216  ;;  %v211_v29 = vpop.permute.xlu0 %210 }
  0xa6   : > { %vm257_vm2 = vcmp.eq.s32.totalorder %v1788_v21, %v211_v29  ;;  %vm258_vm3 = vcmp.eq.s32.totalorder %v1791_v22, %v211_v29  ;;  %vm261_vm8 = vcmp.eq.s32.totalorder %v1788_v21, %v217_v28  ;;  %vm262_vm9 = vcmp.eq.s32.totalorder %v1791_v22, %v217_v28  ;;  %v366_v28 = vld [vmem:[%s1765_s18 + $0x68] sm:$0xff]  ;;  %v361_v29 = vld [vmem:[%s1765_s18 + $0x40] sm:$0xff] }
  0xa7   : > { %v289_v30 = vsel %vm257_vm2, 1.0, %v1726_v24  ;;  %v290_v31 = vsel %vm258_vm3, 1.0, %v1726_v24  ;;  %v244_v32 = vpop.permute.xlu2 %243  ;;  %v293_v46 = vsel %vm261_vm8, 1.0, %v1726_v24  ;;  %v294_v47 = vsel %vm262_vm9, 1.0, %v1726_v24 }
  0xa8   : > { %v1498_v33 = vpack.i.bf16 %v289_v30, %v290_v31  ;;  %vm279_vm4 = vcmp.eq.s32.totalorder %v1788_v21, %v244_v32  ;;  %vm280_vm5 = vcmp.eq.s32.totalorder %v1791_v22, %v244_v32  ;;  %v1502_v50 = vpack.i.bf16 %v293_v46, %v294_v47  ;;  %v360_v30 = vld [vmem:[%s1765_s18 + $0x38] sm:$0xff]  ;;  %v359_v31 = vld [vmem:[%s1765_s18 + $0x30] sm:$0xff]  ;;  %v358_v32 = vld [vmem:[%s1765_s18 + $0x28] sm:$0xff] }
  0xa9   : > { %v1810_v34 = vsel %vm279_vm4, 1.0, %v1726_v24  ;;  %v1813_v35 = vsel %vm280_vm5, 1.0, %v1726_v24  ;;  %vm267_vm8 = vcmp.eq.s32.totalorder %v1788_v21, %v1786_v20  ;;  %vm268_vm9 = vcmp.eq.s32.totalorder %v1791_v22, %v1786_v20 }
  0xaa   : > { %1499 = vxpose.xlu1.b32.start [1/16] %v1498_v33, 128  ;;  %v1520_v36 = vpack.i.bf16 %v1810_v34, %v1813_v35  ;;  %v299_v9 = vsel %vm267_vm8, 1.0, %v1726_v24  ;;  %v300_v10 = vsel %vm268_vm9, 1.0, %v1726_v24  ;;  %v357_v33 = vld [vmem:[%s1765_s18 + $0x20] sm:$0xff]  ;;  %v356_v34 = vld [vmem:[%s1765_s18 + $0x18] sm:$0xff]  ;;  %v355_v35 = vld [vmem:[%s1765_s18 + $0x10] sm:$0xff] }
  0xab   : > { %v1508_v14 = vpack.i.bf16 %v299_v9, %v300_v10 }
  0xad   : > { %v220_v37 = vpop.permute.xlu1 %219  ;;  %v214_v38 = vpop.permute.xlu0 %213 }
  0xae   : > { %vm259_vm6 = vcmp.eq.s32.totalorder %v1788_v21, %v214_v38  ;;  %vm260_vm7 = vcmp.eq.s32.totalorder %v1791_v22, %v214_v38  ;;  %vm263_vm12 = vcmp.eq.s32.totalorder %v1788_v21, %v220_v37  ;;  %vm264_vm13 = vcmp.eq.s32.totalorder %v1791_v22, %v220_v37  ;;  %v353_v37 = vld [vmem:[%s1765_s18] sm:$0xff] }
  0xaf   : > { %v291_v39 = vsel %vm259_vm6, 1.0, %v1726_v24  ;;  %v292_v40 = vsel %vm260_vm7, 1.0, %v1726_v24  ;;  %v253_v41 = vpop.permute.xlu2 %252  ;;  %v295_v51 = vsel %vm263_vm12, 1.0, %v1726_v24  ;;  %v296_v52 = vsel %vm264_vm13, 1.0, %v1726_v24 }
  0xb0   : > { %v1500_v42 = vpack.i.bf16 %v291_v39, %v292_v40  ;;  %vm285_vm10 = vcmp.eq.s32.totalorder %v1788_v21, %v253_v41  ;;  %vm286_vm11 = vcmp.eq.s32.totalorder %v1791_v22, %v253_v41  ;;  %v1504_v59 = vpack.i.bf16 %v295_v51, %v296_v52 }
  0xb1   : > { %v1826_v43 = vsel %vm285_vm10, 1.0, %v1726_v24  ;;  %v1829_v44 = vsel %vm286_vm11, 1.0, %v1726_v24 }
  0xb2   : > { %1501 = vxpose.xlu1.b32.cont [2/16] %v1500_v42, 128  ;;  %v1526_v45 = vpack.i.bf16 %v1826_v43, %v1829_v44 }
  0xb5   : > { %v232_v48 = vpop.permute.xlu1 %231  ;;  %v229_v49 = vpop.permute.xlu0 %228 }
  0xb6   : > { %vm269_vm12 = vcmp.eq.s32.totalorder %v1788_v21, %v229_v49  ;;  %vm270_vm13 = vcmp.eq.s32.totalorder %v1791_v22, %v229_v49  ;;  %vm271_vm14 = vcmp.eq.s32.totalorder %v1788_v21, %v232_v48  ;;  %vm272_vm15 = vcmp.eq.s32.totalorder %v1791_v22, %v232_v48 }
  0xb7   : > { %v301_v16 = vsel %vm269_vm12, 1.0, %v1726_v24  ;;  %v302_v17 = vsel %vm270_vm13, 1.0, %v1726_v24  ;;  %v303_v19 = vsel %vm271_vm14, 1.0, %v1726_v24  ;;  %v304_v20 = vsel %vm272_vm15, 1.0, %v1726_v24 }
  0xb8   : > { %v1510_v18 = vpack.i.bf16 %v301_v16, %v302_v17  ;;  %v1512_v23 = vpack.i.bf16 %v303_v19, %v304_v20 }
  0xba   : > { %1503 = vxpose.xlu1.b32.cont [3/16] %v1502_v50, 128 }
  0xbd   : > { %v241_v53 = vpop.permute.xlu1 %240  ;;  %v238_v54 = vpop.permute.xlu0 %237 }
  0xbe   : > { %vm277_vm0 = vcmp.eq.s32.totalorder %v1788_v21, %v241_v53  ;;  %vm278_vm1 = vcmp.eq.s32.totalorder %v1791_v22, %v241_v53  ;;  %vm275_vm2 = vcmp.eq.s32.totalorder %v1788_v21, %v238_v54  ;;  %vm276_vm3 = vcmp.eq.s32.totalorder %v1791_v22, %v238_v54 }
  0xbf   : > { %v309_v55 = vsel %vm277_vm0, 1.0, %v1726_v24  ;;  %v310_v56 = vsel %vm278_vm1, 1.0, %v1726_v24  ;;  %v307_v57 = vsel %vm275_vm2, 1.0, %v1726_v24  ;;  %v308_v58 = vsel %vm276_vm3, 1.0, %v1726_v24 }
  0xc0   : > { %v1518_v60 = vpack.i.bf16 %v309_v55, %v310_v56  ;;  %v1516_v61 = vpack.i.bf16 %v307_v57, %v308_v58 }
  0xc2   : > { %1505 = vxpose.xlu1.b32.cont [4/16] %v1504_v59, 128 }
  0xc5   : > { %v250_v1 = vpop.permute.xlu1 %249  ;;  %v247_v2 = vpop.permute.xlu0 %246 }
  0xc6   : > { %vm283_vm4 = vcmp.eq.s32.totalorder %v1788_v21, %v250_v1  ;;  %vm284_vm5 = vcmp.eq.s32.totalorder %v1791_v22, %v250_v1  ;;  %vm281_vm6 = vcmp.eq.s32.totalorder %v1788_v21, %v247_v2  ;;  %vm282_vm7 = vcmp.eq.s32.totalorder %v1791_v22, %v247_v2 }
  0xc7   : > { %v1864_v3 = vsel %vm283_vm4, 1.0, %v1726_v24  ;;  %v1867_v4 = vsel %vm284_vm5, 1.0, %v1726_v24  ;;  %v313_v5 = vsel %vm281_vm6, 1.0, %v1726_v24  ;;  %v314_v6 = vsel %vm282_vm7, 1.0, %v1726_v24 }
  0xc8   : > { %v1524_v7 = vpack.i.bf16 %v1864_v3, %v1867_v4  ;;  %v1522_v8 = vpack.i.bf16 %v313_v5, %v314_v6 }
  0xca   : > { %1507 = vxpose.xlu1.b32.cont [5/16] %v1506_v0, 128 }
  0xcd   : > { %v256_v11 = vpop.permute.xlu0 %255 }
  0xce   : > { %vm287_vm10 = vcmp.eq.s32.totalorder %v1788_v21, %v256_v11  ;;  %vm288_vm11 = vcmp.eq.s32.totalorder %v1791_v22, %v256_v11  ;;  %v368_v21 = vld [vmem:[%s1765_s18 + $0x78] sm:$0xff]  ;;  %v367_v22 = vld [vmem:[%s1765_s18 + $0x70] sm:$0xff] }
  0xcf   : > { %v1882_v12 = vsel %vm287_vm10, 1.0, %v1726_v24  ;;  %v1885_v13 = vsel %vm288_vm11, 1.0, %v1726_v24  ;;  %433 = vmatpush.msra.mxu0 %v368_v21  ;;  %1427 = vmatpush.msra.mxu2 %v368_v21  ;;  %v365_v24 = vld [vmem:[%s1765_s18 + $0x60] sm:$0xff] }
  0xd0   : > { %v1528_v15 = vpack.i.bf16 %v1882_v12, %v1885_v13  ;;  %1426 = vmatpush.msra.mxu1 %v368_v21  ;;  %1428 = vmatpush.msra.mxu3 %v368_v21  ;;  %v321_v21 = vld [vmem:[#allocation2] sm:$0xff] }
  0xd1   : > { %434 = vmatpush.msra.mxu0 %v367_v22  ;;  %1430 = vmatpush.msra.mxu2 %v367_v22 }
  0xd2   : > { %1509 = vxpose.xlu1.b32.cont [6/16] %v1508_v14, 128  ;;  %1429 = vmatpush.msra.mxu1 %v367_v22 }
  0xd3   : > { %1431 = vmatpush.msra.mxu3 %v367_v22  ;;  %435 = vmatpush.msra.mxu0 %v366_v28 }
  0xd4   : > { %1433 = vmatpush.msra.mxu2 %v366_v28  ;;  %1432 = vmatpush.msra.mxu1 %v366_v28 }
  0xd5   : > { %1434 = vmatpush.msra.mxu3 %v366_v28  ;;  %436 = vmatpush.msra.mxu0 %v365_v24 }
  0xd6   : > { %1436 = vmatpush.msra.mxu2 %v365_v24  ;;  %1435 = vmatpush.msra.mxu1 %v365_v24 }
  0xd7   : > { %437 = vmatpush.msra.mxu0 %v364_v25  ;;  %1437 = vmatpush.msra.mxu3 %v365_v24  ;;  %v337_v24 = vld [vmem:[#allocation2 + $0x80] sm:$0xff] }
  0xd8   : > { %1439 = vmatpush.msra.mxu2 %v364_v25  ;;  %1438 = vmatpush.msra.mxu1 %v364_v25 }
  0xd9   : > { %438 = vmatpush.msra.mxu0 %v363_v26  ;;  %1440 = vmatpush.msra.mxu3 %v364_v25 }
  0xda   : > { %1511 = vxpose.xlu1.b32.cont [7/16] %v1510_v18, 128  ;;  %1442 = vmatpush.msra.mxu2 %v363_v26 }
  0xdb   : > { %1441 = vmatpush.msra.mxu1 %v363_v26  ;;  %1443 = vmatpush.msra.mxu3 %v363_v26  ;;  %v322_v26 = vld [vmem:[#allocation2 + $0x8] sm:$0xff] }
  0xe2   : > { %1513 = vxpose.xlu1.b32.cont [8/16] %v1512_v23, 128 }
  0xea   : > { %1515 = vxpose.xlu1.b32.cont [9/16] %v1514_v27, 128  ;;  %v362_v27 = vld [vmem:[%s1765_s18 + $0x48] sm:$0xff] }
  0xeb   : > { %439 = vmatpush.msra.mxu0 %v362_v27  ;;  %1445 = vmatpush.msra.mxu2 %v362_v27 }
  0xec   : > { %1444 = vmatpush.msra.mxu1 %v362_v27  ;;  %1446 = vmatpush.msra.mxu3 %v362_v27 }
  0xed   : > { %440 = vmatpush.msra.mxu0 %v361_v29  ;;  %1448 = vmatpush.msra.mxu2 %v361_v29 }
  0xee   : > { %1447 = vmatpush.msra.mxu1 %v361_v29  ;;  %1449 = vmatpush.msra.mxu3 %v361_v29 }
  0xef   : > { %441 = vmatpush.msra.mxu0 %v360_v30  ;;  %1451 = vmatpush.msra.mxu2 %v360_v30 }
  0xf0   : > { %1450 = vmatpush.msra.mxu1 %v360_v30  ;;  %1452 = vmatpush.msra.mxu3 %v360_v30 }
  0xf1   : > { %442 = vmatpush.msra.mxu0 %v359_v31  ;;  %1454 = vmatpush.msra.mxu2 %v359_v31 }
  0xf2   : > { %1517 = vxpose.xlu1.b32.cont [10/16] %v1516_v61, 128  ;;  %1453 = vmatpush.msra.mxu1 %v359_v31 }
  0xf3   : > { %443 = vmatpush.msra.mxu0 %v358_v32  ;;  %1457 = vmatpush.msra.mxu2 %v358_v32 }
  0xf4   : > { %1455 = vmatpush.msra.mxu3 %v359_v31  ;;  %1456 = vmatpush.msra.mxu1 %v358_v32  ;;  %v338_v31 = vld [vmem:[#allocation2 + $0x88] sm:$0xff] }
  0xf5   : > { %444 = vmatpush.msra.mxu0 %v357_v33  ;;  %1460 = vmatpush.msra.mxu2 %v357_v33 }
  0xf6   : > { %1458 = vmatpush.msra.mxu3 %v358_v32  ;;  %1459 = vmatpush.msra.mxu1 %v357_v33 }
  0xf7   : > { %445 = vmatpush.msra.mxu0 %v356_v34  ;;  %1463 = vmatpush.msra.mxu2 %v356_v34 }
  0xf8   : > { %1461 = vmatpush.msra.mxu3 %v357_v33  ;;  %1462 = vmatpush.msra.mxu1 %v356_v34  ;;  %v323_v33 = vld [vmem:[#allocation2 + $0x10] sm:$0xff] }
  0xf9   : > { %446 = vmatpush.msra.mxu0 %v355_v35  ;;  %1466 = vmatpush.msra.mxu2 %v355_v35 }
  0xfa   : > { %1519 = vxpose.xlu1.b32.cont [11/16] %v1518_v60, 128  ;;  %1464 = vmatpush.msra.mxu3 %v356_v34 }
  0xfb   : > { %1465 = vmatpush.msra.mxu1 %v355_v35 }
  0xfc   : > { %1467 = vmatpush.msra.mxu3 %v355_v35 }
 0x102   : > { %1521 = vxpose.xlu1.b32.cont [12/16] %v1520_v36, 128  ;;  %v354_v36 = vld [vmem:[%s1765_s18 + $0x8] sm:$0xff] }
 0x103   : > { %447 = vmatpush.msra.mxu0 %v354_v36  ;;  %1469 = vmatpush.msra.mxu2 %v354_v36 }
 0x104   : > { %1468 = vmatpush.msra.mxu1 %v354_v36  ;;  %1470 = vmatpush.msra.mxu3 %v354_v36 }
 0x105   : > { %448 = vmatpush.msra.mxu0 %v353_v37  ;;  %1472 = vmatpush.msra.mxu2 %v353_v37 }
 0x106   : > { %1471 = vmatpush.msra.mxu1 %v353_v37  ;;  %1473 = vmatpush.msra.mxu3 %v353_v37  ;;  %v339_v37 = vld [vmem:[#allocation2 + $0x90] sm:$0xff] }
 0x10a   : > { %1523 = vxpose.xlu1.b32.cont [13/16] %v1522_v8, 128 }
 0x112   : > { %1525 = vxpose.xlu1.b32.cont [14/16] %v1524_v7, 128 }
 0x11a   : > { %1527 = vxpose.xlu1.b32.cont [15/16] %v1526_v45, 128 }
 0x122   : > { %1529 = vxpose.xlu1.b32.end [16/16] %v1528_v15, 128 }
 0x14e   : > { %v1530_v38 = vpop.trf.xlu1 }
 0x14f   : > { %v1534_v39 = vunpack.i.h.bf16 %v1530_v38  ;;  %v1531_v40 = vunpack.i.l.bf16 %v1530_v38 }
 0x151   : > { %449 = vmatmul.f32.vlgmr.msra.gmra.mxu0 %v1534_v39  ;;  %497 = vmatmul.f32.vlgmr.msra.gmra.mxu2 %v1531_v40  ;;  %v324_v39 = vld [vmem:[#allocation2 + $0x18] sm:$0xff] }
 0x156   : > { %v1535_v41 = vpop.trf.xlu1 }
 0x157   : > { %v1539_v42 = vunpack.i.h.bf16 %v1535_v41  ;;  %v1536_v43 = vunpack.i.l.bf16 %v1535_v41 }
 0x159   : > { %452 = vmatmul.f32.gmra.mxu0 %v1539_v42  ;;  %500 = vmatmul.f32.gmra.mxu2 %v1536_v43  ;;  %v340_v43 = vld [vmem:[#allocation2 + $0x98] sm:$0xff] }
 0x15e   : > { %v1540_v44 = vpop.trf.xlu1 }
 0x15f   : > { %v1544_v45 = vunpack.i.h.bf16 %v1540_v44  ;;  %v1541_v46 = vunpack.i.l.bf16 %v1540_v44 }
 0x161   : > { %455 = vmatmul.f32.gmra.mxu0 %v1544_v45  ;;  %503 = vmatmul.f32.gmra.mxu2 %v1541_v46  ;;  %v325_v45 = vld [vmem:[#allocation2 + $0x20] sm:$0xff] }
 0x166   : > { %v1545_v47 = vpop.trf.xlu1 }
 0x167   : > { %v1549_v48 = vunpack.i.h.bf16 %v1545_v47  ;;  %v1546_v49 = vunpack.i.l.bf16 %v1545_v47 }
 0x169   : > { %458 = vmatmul.f32.gmra.mxu0 %v1549_v48  ;;  %506 = vmatmul.f32.gmra.mxu2 %v1546_v49  ;;  %v341_v49 = vld [vmem:[#allocation2 + $0xa0] sm:$0xff] }
 0x16e   : > { %v1550_v50 = vpop.trf.xlu1 }
 0x16f   : > { %v1554_v51 = vunpack.i.h.bf16 %v1550_v50  ;;  %v1551_v52 = vunpack.i.l.bf16 %v1550_v50 }
 0x171   : > { %461 = vmatmul.f32.gmra.mxu0 %v1554_v51  ;;  %509 = vmatmul.f32.gmra.mxu2 %v1551_v52  ;;  %v326_v51 = vld [vmem:[#allocation2 + $0x28] sm:$0xff] }
 0x176   : > { %v1555_v53 = vpop.trf.xlu1 }
 0x177   : > { %v1559_v54 = vunpack.i.h.bf16 %v1555_v53  ;;  %v1556_v55 = vunpack.i.l.bf16 %v1555_v53 }
 0x179   : > { %464 = vmatmul.f32.gmra.mxu0 %v1559_v54  ;;  %512 = vmatmul.f32.gmra.mxu2 %v1556_v55  ;;  %v342_v55 = vld [vmem:[#allocation2 + $0xa8] sm:$0xff] }
 0x17e   : > { %v1560_v56 = vpop.trf.xlu1 }
 0x17f   : > { %v1564_v57 = vunpack.i.h.bf16 %v1560_v56  ;;  %v1561_v58 = vunpack.i.l.bf16 %v1560_v56 }
 0x181   : > { %467 = vmatmul.f32.gmra.mxu0 %v1564_v57  ;;  %515 = vmatmul.f32.gmra.mxu2 %v1561_v58  ;;  %v327_v57 = vld [vmem:[#allocation2 + $0x30] sm:$0xff] }
 0x186   : > { %v1565_v59 = vpop.trf.xlu1 }
 0x187   : > { %v1569_v60 = vunpack.i.h.bf16 %v1565_v59  ;;  %v1566_v61 = vunpack.i.l.bf16 %v1565_v59 }
 0x189   : > { %470 = vmatmul.f32.gmra.mxu0 %v1569_v60  ;;  %518 = vmatmul.f32.gmra.mxu2 %v1566_v61  ;;  %v343_v61 = vld [vmem:[#allocation2 + $0xb0] sm:$0xff] }
 0x18e   : > { %v1570_v62 = vpop.trf.xlu1 }
 0x18f   : > { %v1574_v63 = vunpack.i.h.bf16 %v1570_v62  ;;  %v1571_v0 = vunpack.i.l.bf16 %v1570_v62 }
 0x191   : > { %473 = vmatmul.f32.vlgmr.msra.gmra.mxu1 %v1574_v63  ;;  %521 = vmatmul.f32.vlgmr.msra.gmra.mxu3 %v1571_v0  ;;  %v328_v63 = vld [vmem:[#allocation2 + $0x38] sm:$0xff] }
 0x196   : > { %v1575_v1 = vpop.trf.xlu1 }
 0x197   : > { %v1579_v2 = vunpack.i.h.bf16 %v1575_v1  ;;  %v1576_v3 = vunpack.i.l.bf16 %v1575_v1 }
 0x199   : > { %476 = vmatmul.f32.gmra.mxu1 %v1579_v2  ;;  %524 = vmatmul.f32.gmra.mxu3 %v1576_v3  ;;  %v344_v3 = vld [vmem:[#allocation2 + $0xb8] sm:$0xff] }
 0x19e   : > { %v1580_v4 = vpop.trf.xlu1 }
 0x19f   : > { %v1584_v5 = vunpack.i.h.bf16 %v1580_v4  ;;  %v1581_v6 = vunpack.i.l.bf16 %v1580_v4 }
 0x1a1   : > { %479 = vmatmul.f32.gmra.mxu1 %v1584_v5  ;;  %527 = vmatmul.f32.gmra.mxu3 %v1581_v6  ;;  %v329_v5 = vld [vmem:[#allocation2 + $0x40] sm:$0xff] }
 0x1a6   : > { %v1585_v7 = vpop.trf.xlu1 }
 0x1a7   : > { %v1589_v8 = vunpack.i.h.bf16 %v1585_v7  ;;  %v1586_v9 = vunpack.i.l.bf16 %v1585_v7 }
 0x1a9   : > { %482 = vmatmul.f32.gmra.mxu1 %v1589_v8  ;;  %530 = vmatmul.f32.gmra.mxu3 %v1586_v9  ;;  %v345_v9 = vld [vmem:[#allocation2 + $0xc0] sm:$0xff] }
 0x1ae   : > { %v1590_v10 = vpop.trf.xlu1 }
 0x1af   : > { %v1594_v11 = vunpack.i.h.bf16 %v1590_v10  ;;  %v1591_v12 = vunpack.i.l.bf16 %v1590_v10 }
 0x1b1   : > { %485 = vmatmul.f32.gmra.mxu1 %v1594_v11  ;;  %533 = vmatmul.f32.gmra.mxu3 %v1591_v12  ;;  %v330_v11 = vld [vmem:[#allocation2 + $0x48] sm:$0xff] }
 0x1b6   : > { %v1595_v13 = vpop.trf.xlu1 }
 0x1b7   : > { %v1599_v14 = vunpack.i.h.bf16 %v1595_v13  ;;  %v1596_v15 = vunpack.i.l.bf16 %v1595_v13 }
 0x1b9   : > { %488 = vmatmul.f32.gmra.mxu1 %v1599_v14  ;;  %536 = vmatmul.f32.gmra.mxu3 %v1596_v15  ;;  %v346_v15 = vld [vmem:[#allocation2 + $0xc8] sm:$0xff] }
 0x1be   : > { %v1600_v16 = vpop.trf.xlu1 }
 0x1bf   : > { %v1604_v17 = vunpack.i.h.bf16 %v1600_v16  ;;  %v1601_v18 = vunpack.i.l.bf16 %v1600_v16 }
 0x1c1   : > { %491 = vmatmul.f32.gmra.mxu1 %v1604_v17  ;;  %539 = vmatmul.f32.gmra.mxu3 %v1601_v18  ;;  %v331_v17 = vld [vmem:[#allocation2 + $0x50] sm:$0xff] }
 0x1c6   : > { %v1605_v19 = vpop.trf.xlu1 }
 0x1c7   : > { %v1609_v20 = vunpack.i.h.bf16 %v1605_v19  ;;  %v1606_v23 = vunpack.i.l.bf16 %v1605_v19 }
 0x1c9   : > { %494 = vmatmul.f32.gmra.mxu1 %v1609_v20  ;;  %542 = vmatmul.f32.gmra.mxu3 %v1606_v23  ;;  %v347_v23 = vld [vmem:[#allocation2 + $0xd0] sm:$0xff] }
 0x1ce   : > { %v450_v22 = vpop.f32.mrf.mxu0 }
 0x1cf   : > { %v546_v28 = vadd.f32 %v450_v22, %v321_v21  ;;  %v332_v22 = vld [vmem:[#allocation2 + $0x58] sm:$0xff] }
 0x1d1   : > { %578 = vst [vmem:[#allocation2] sm:$0xff] %v546_v28 }
 0x1d4   : > { %v498_v25 = vpop.f32.mrf.mxu2 }
 0x1d5   : > { %v562_v27 = vadd.f32 %v498_v25, %v337_v24 }
 0x1d6   : > { %v453_v29 = vpop.f32.mrf.mxu0 }
 0x1d7   : > { %594 = vst [vmem:[#allocation2 + $0x80] sm:$0xff] %v562_v27  ;;  %v547_v30 = vadd.f32 %v453_v29, %v322_v26  ;;  %v348_v26 = vld [vmem:[#allocation2 + $0xd8] sm:$0xff]  ;;  %v333_v29 = vld [vmem:[#allocation2 + $0x60] sm:$0xff] }
 0x1d9   : > { %579 = vst [vmem:[#allocation2 + $0x8] sm:$0xff] %v547_v30 }
 0x1dc   : > { %v501_v32 = vpop.f32.mrf.mxu2 }
 0x1dd   : > { %v563_v34 = vadd.f32 %v501_v32, %v338_v31 }
 0x1de   : > { %v456_v35 = vpop.f32.mrf.mxu0 }
 0x1df   : > { %595 = vst [vmem:[#allocation2 + $0x88] sm:$0xff] %v563_v34  ;;  %v548_v36 = vadd.f32 %v456_v35, %v323_v33  ;;  %v349_v33 = vld [vmem:[#allocation2 + $0xe0] sm:$0xff]  ;;  %v334_v35 = vld [vmem:[#allocation2 + $0x68] sm:$0xff] }
 0x1e1   : > { %580 = vst [vmem:[#allocation2 + $0x10] sm:$0xff] %v548_v36 }
 0x1e4   : > { %v504_v38 = vpop.f32.mrf.mxu2 }
 0x1e5   : > { %v564_v40 = vadd.f32 %v504_v38, %v339_v37 }
 0x1e6   : > { %v459_v41 = vpop.f32.mrf.mxu0 }
 0x1e7   : > { %596 = vst [vmem:[#allocation2 + $0x90] sm:$0xff] %v564_v40  ;;  %v549_v42 = vadd.f32 %v459_v41, %v324_v39  ;;  %v350_v39 = vld [vmem:[#allocation2 + $0xe8] sm:$0xff]  ;;  %v335_v41 = vld [vmem:[#allocation2 + $0x70] sm:$0xff] }
 0x1e9   : > { %581 = vst [vmem:[#allocation2 + $0x18] sm:$0xff] %v549_v42 }
 0x1ec   : > { %v507_v44 = vpop.f32.mrf.mxu2 }
 0x1ed   : > { %v565_v46 = vadd.f32 %v507_v44, %v340_v43 }
 0x1ee   : > { %v462_v47 = vpop.f32.mrf.mxu0 }
 0x1ef   : > { %597 = vst [vmem:[#allocation2 + $0x98] sm:$0xff] %v565_v46  ;;  %v550_v48 = vadd.f32 %v462_v47, %v325_v45  ;;  %v351_v45 = vld [vmem:[#allocation2 + $0xf0] sm:$0xff]  ;;  %v336_v47 = vld [vmem:[#allocation2 + $0x78] sm:$0xff] }
 0x1f1   : > { %582 = vst [vmem:[#allocation2 + $0x20] sm:$0xff] %v550_v48 }
 0x1f4   : > { %v510_v50 = vpop.f32.mrf.mxu2 }
 0x1f5   : > { %v566_v52 = vadd.f32 %v510_v50, %v341_v49 }
 0x1f6   : > { %v465_v53 = vpop.f32.mrf.mxu0 }
 0x1f7   : > { %598 = vst [vmem:[#allocation2 + $0xa0] sm:$0xff] %v566_v52  ;;  %v551_v54 = vadd.f32 %v465_v53, %v326_v51  ;;  %v352_v51 = vld [vmem:[#allocation2 + $0xf8] sm:$0xff] }
 0x1f9   : > { %583 = vst [vmem:[#allocation2 + $0x28] sm:$0xff] %v551_v54 }
 0x1fc   : > { %v513_v56 = vpop.f32.mrf.mxu2 }
 0x1fd   : > { %v567_v58 = vadd.f32 %v513_v56, %v342_v55 }
 0x1fe   : > { %v468_v59 = vpop.f32.mrf.mxu0 }
 0x1ff   : > { %599 = vst [vmem:[#allocation2 + $0xa8] sm:$0xff] %v567_v58  ;;  %v552_v60 = vadd.f32 %v468_v59, %v327_v57 }
 0x201   : > { %584 = vst [vmem:[#allocation2 + $0x30] sm:$0xff] %v552_v60 }
 0x204   : > { %v516_v62 = vpop.f32.mrf.mxu2 }
 0x205   : > { %v568_v0 = vadd.f32 %v516_v62, %v343_v61 }
 0x206   : > { %v471_v1 = vpop.f32.mrf.mxu0 }
 0x207   : > { %600 = vst [vmem:[#allocation2 + $0xb0] sm:$0xff] %v568_v0  ;;  %v553_v2 = vadd.f32 %v471_v1, %v328_v63 }
 0x209   : > { %585 = vst [vmem:[#allocation2 + $0x38] sm:$0xff] %v553_v2 }
 0x20c   : > { %v519_v4 = vpop.f32.mrf.mxu2 }
 0x20d   : > { %v569_v6 = vadd.f32 %v519_v4, %v344_v3 }
 0x20e   : > { %v474_v7 = vpop.f32.mrf.mxu1 }
 0x20f   : > { %601 = vst [vmem:[#allocation2 + $0xb8] sm:$0xff] %v569_v6  ;;  %v554_v8 = vadd.f32 %v474_v7, %v329_v5 }
 0x211   : > { %586 = vst [vmem:[#allocation2 + $0x40] sm:$0xff] %v554_v8 }
 0x214   : > { %v522_v10 = vpop.f32.mrf.mxu3 }
 0x215   : > { %v570_v12 = vadd.f32 %v522_v10, %v345_v9 }
 0x216   : > { %v477_v13 = vpop.f32.mrf.mxu1 }
 0x217   : > { %602 = vst [vmem:[#allocation2 + $0xc0] sm:$0xff] %v570_v12  ;;  %v555_v14 = vadd.f32 %v477_v13, %v330_v11 }
 0x219   : > { %587 = vst [vmem:[#allocation2 + $0x48] sm:$0xff] %v555_v14 }
 0x21c   : > { %v525_v16 = vpop.f32.mrf.mxu3 }
 0x21d   : > { %v571_v18 = vadd.f32 %v525_v16, %v346_v15 }
 0x21e   : > { %v480_v19 = vpop.f32.mrf.mxu1 }
 0x21f   : > { %603 = vst [vmem:[#allocation2 + $0xc8] sm:$0xff] %v571_v18  ;;  %v556_v20 = vadd.f32 %v480_v19, %v331_v17 }
 0x221   : > { %588 = vst [vmem:[#allocation2 + $0x50] sm:$0xff] %v556_v20 }
 0x224   : > { %v528_v21 = vpop.f32.mrf.mxu3 }
 0x225   : > { %v572_v28 = vadd.f32 %v528_v21, %v347_v23 }
 0x226   : > { %v483_v24 = vpop.f32.mrf.mxu1 }
 0x227   : > { %604 = vst [vmem:[#allocation2 + $0xd0] sm:$0xff] %v572_v28  ;;  %v557_v25 = vadd.f32 %v483_v24, %v332_v22 }
 0x229   : > { %589 = vst [vmem:[#allocation2 + $0x58] sm:$0xff] %v557_v25 }
 0x22c   : > { %v531_v27 = vpop.f32.mrf.mxu3 }
 0x22d   : > { %v573_v30 = vadd.f32 %v531_v27, %v348_v26 }
 0x22e   : > { %v486_v31 = vpop.f32.mrf.mxu1 }
 0x22f   : > { %605 = vst [vmem:[#allocation2 + $0xd8] sm:$0xff] %v573_v30  ;;  %v558_v32 = vadd.f32 %v486_v31, %v333_v29 }
 0x231   : > { %590 = vst [vmem:[#allocation2 + $0x60] sm:$0xff] %v558_v32 }
 0x234   : > { %v534_v34 = vpop.f32.mrf.mxu3 }
 0x235   : > { %v574_v36 = vadd.f32 %v534_v34, %v349_v33 }
 0x236   : > { %v489_v37 = vpop.f32.mrf.mxu1 }
 0x237   : > { %606 = vst [vmem:[#allocation2 + $0xe0] sm:$0xff] %v574_v36  ;;  %v559_v38 = vadd.f32 %v489_v37, %v334_v35 }
 0x239   : > { %591 = vst [vmem:[#allocation2 + $0x68] sm:$0xff] %v559_v38 }
 0x23c   : > { %v537_v40 = vpop.f32.mrf.mxu3 }
 0x23d   : > { %v575_v42 = vadd.f32 %v537_v40, %v350_v39 }
 0x23e   : > { %v492_v43 = vpop.f32.mrf.mxu1 }
 0x23f   : > { %607 = vst [vmem:[#allocation2 + $0xe8] sm:$0xff] %v575_v42  ;;  %v560_v44 = vadd.f32 %v492_v43, %v335_v41 }
 0x241   : > { %592 = vst [vmem:[#allocation2 + $0x70] sm:$0xff] %v560_v44 }
 0x244   : > { %v540_v46 = vpop.f32.mrf.mxu3 }
 0x245   : > { %v576_v48 = vadd.f32 %v540_v46, %v351_v45 }
 0x246   : > { %v495_v49 = vpop.f32.mrf.mxu1 }
 0x247   : > { %608 = vst [vmem:[#allocation2 + $0xf0] sm:$0xff] %v576_v48  ;;  %v561_v50 = vadd.f32 %v495_v49, %v336_v47 }
 0x249   : > { %593 = vst [vmem:[#allocation2 + $0x78] sm:$0xff] %v561_v50 }
 0x24b   : > { %613 = sbr.rel (%p1421_p5) target bundleno = 821 (0x335), region = 36 }
 0x24c   : > { %v543_v52 = vpop.f32.mrf.mxu3 }
 0x24d   : > { %v577_v53 = vadd.f32 %v543_v52, %v352_v51 }
 0x24f   : > { %609 = vst [vmem:[#allocation2 + $0xf8] sm:$0xff] %v577_v53 }
 0x250   : > { %v1929_v54 = vld [vmem:[#allocation2 + $0x20] sm:$0xff]  ;;  %v1931_v55 = vld [vmem:[#allocation2 + $0x10] sm:$0xff]  ;;  %v1727_v57 = vmov 127   ;;  %v1938_v61 = vld [vmem:[#allocation2 + $0x28] sm:$0xff] }
 0x251   : > { %v1933_v56 = vld [vmem:[#allocation2] sm:$0xff]  ;;  %1612 = vset.pattern.permute.xlu2 %v1727_v57  ;;  %1611 = vset.pattern.permute.xlu1 %v1727_v57  ;;  %v650_v58 = vmax.f32 %v1929_v54, 1.0  ;;  %v648_v59 = vmax.f32 %v1931_v55, 1.0  ;;  %v1940_v62 = vld [vmem:[#allocation2 + $0x18] sm:$0xff]  ;;  %v1942_v63 = vld [vmem:[#allocation2 + $0x8] sm:$0xff]  ;;  %v651_v0 = vmax.f32 %v1938_v61, 1.0 }
 0x252   : > { %v646_v60 = vmax.f32 %v1933_v56, 1.0  ;;  %1610 = vset.pattern.permute.xlu0 %v1727_v57  ;;  %v649_v1 = vmax.f32 %v1940_v62, 1.0  ;;  %v647_v2 = vmax.f32 %v1942_v63, 1.0  ;;  %v1947_v3 = vld [vmem:[#allocation2 + $0x40] sm:$0xff]  ;;  %v1949_v4 = vld [vmem:[#allocation2 + $0x38] sm:$0xff]  ;;  %v1951_v5 = vld [vmem:[#allocation2 + $0x30] sm:$0xff] }
 0x253   : > { %700 = vperm.xlu2 %1612, %v650_v58   ;;  %690 = vperm.xlu1 %1611, %v648_v59   ;;  %v654_v6 = vmax.f32 %v1947_v3, 1.0  ;;  %v653_v7 = vmax.f32 %v1949_v4, 1.0  ;;  %v652_v8 = vmax.f32 %v1951_v5, 1.0  ;;  %v1956_v9 = vld [vmem:[#allocation2 + $0x58] sm:$0xff]  ;;  %v1958_v10 = vld [vmem:[#allocation2 + $0x50] sm:$0xff]  ;;  %v1960_v11 = vld [vmem:[#allocation2 + $0x48] sm:$0xff] }
 0x254   : > { %680 = vperm.xlu0 %1610, %v646_v60   ;;  %v657_v12 = vmax.f32 %v1956_v9, 1.0  ;;  %v656_v13 = vmax.f32 %v1958_v10, 1.0  ;;  %v655_v14 = vmax.f32 %v1960_v11, 1.0  ;;  %v1965_v15 = vld [vmem:[#allocation2 + $0x70] sm:$0xff]  ;;  %v1967_v16 = vld [vmem:[#allocation2 + $0x68] sm:$0xff]  ;;  %v1969_v17 = vld [vmem:[#allocation2 + $0x60] sm:$0xff] }
 0x255   : > { %v660_v18 = vmax.f32 %v1965_v15, 1.0  ;;  %v659_v19 = vmax.f32 %v1967_v16, 1.0  ;;  %v658_v20 = vmax.f32 %v1969_v17, 1.0  ;;  %v1974_v23 = vld [vmem:[#allocation2 + $0x88] sm:$0xff]  ;;  %v1976_v21 = vld [vmem:[#allocation2 + $0x80] sm:$0xff]  ;;  %v1978_v22 = vld [vmem:[#allocation2 + $0x78] sm:$0xff] }
 0x256   : > { %v663_v28 = vmax.f32 %v1974_v23, 1.0  ;;  %v662_v24 = vmax.f32 %v1976_v21, 1.0  ;;  %v661_v25 = vmax.f32 %v1978_v22, 1.0  ;;  %v1983_v26 = vld [vmem:[#allocation2 + $0xa0] sm:$0xff]  ;;  %v1985_v27 = vld [vmem:[#allocation2 + $0x98] sm:$0xff]  ;;  %v1987_v29 = vld [vmem:[#allocation2 + $0x90] sm:$0xff] }
 0x257   : > { %v666_v30 = vmax.f32 %v1983_v26, 1.0  ;;  %v665_v31 = vmax.f32 %v1985_v27, 1.0  ;;  %v664_v32 = vmax.f32 %v1987_v29, 1.0  ;;  %v1992_v33 = vld [vmem:[#allocation2 + $0xb8] sm:$0xff]  ;;  %v1994_v34 = vld [vmem:[#allocation2 + $0xb0] sm:$0xff]  ;;  %v635_v35 = vld [vmem:[#allocation2 + $0xa8] sm:$0xff] }
 0x258   : > { %v669_v36 = vmax.f32 %v1992_v33, 1.0  ;;  %v668_v37 = vmax.f32 %v1994_v34, 1.0  ;;  %v667_v38 = vmax.f32 %v635_v35, 1.0  ;;  %v1998_v39 = vld [vmem:[#allocation2 + $0xd0] sm:$0xff]  ;;  %v639_v40 = vld [vmem:[#allocation2 + $0xc8] sm:$0xff]  ;;  %v638_v41 = vld [vmem:[#allocation2 + $0xc0] sm:$0xff] }
 0x259   : > { %v672_v42 = vmax.f32 %v1998_v39, 1.0  ;;  %v671_v43 = vmax.f32 %v639_v40, 1.0  ;;  %v670_v44 = vmax.f32 %v638_v41, 1.0  ;;  %v2001_v45 = vld [vmem:[#allocation2 + $0xe8] sm:$0xff]  ;;  %v642_v46 = vld [vmem:[#allocation2 + $0xe0] sm:$0xff]  ;;  %v641_v47 = vld [vmem:[#allocation2 + $0xd8] sm:$0xff] }
 0x25a   : > { %v675_v48 = vmax.f32 %v2001_v45, 1.0  ;;  %v674_v49 = vmax.f32 %v642_v46, 1.0  ;;  %v673_v50 = vmax.f32 %v641_v47, 1.0  ;;  %v645_v51 = vld [vmem:[#allocation2 + $0xf8] sm:$0xff]  ;;  %v644_v52 = vld [vmem:[#allocation2 + $0xf0] sm:$0xff] }
 0x25b   : > { %705 = vperm.xlu2 %1612, %v651_v0   ;;  %695 = vperm.xlu1 %1611, %v649_v1   ;;  %v677_v53 = vmax.f32 %v645_v51, 1.0  ;;  %v676_v57 = vmax.f32 %v644_v52, 1.0 }
 0x25c   : > { %685 = vperm.xlu0 %1610, %v647_v2  }
 0x263   : > { %720 = vperm.xlu2 %1612, %v654_v6   ;;  %715 = vperm.xlu1 %1611, %v653_v7  }
 0x264   : > { %710 = vperm.xlu0 %1610, %v652_v8  }
 0x26b   : > { %735 = vperm.xlu2 %1612, %v657_v12   ;;  %730 = vperm.xlu1 %1611, %v656_v13  }
 0x26c   : > { %725 = vperm.xlu0 %1610, %v655_v14  }
 0x273   : > { %750 = vperm.xlu2 %1612, %v660_v18   ;;  %745 = vperm.xlu1 %1611, %v659_v19  }
 0x274   : > { %740 = vperm.xlu0 %1610, %v658_v20  }
 0x27b   : > { %765 = vperm.xlu2 %1612, %v663_v28   ;;  %760 = vperm.xlu1 %1611, %v662_v24  }
 0x27c   : > { %755 = vperm.xlu0 %1610, %v661_v25  }
 0x283   : > { %780 = vperm.xlu2 %1612, %v666_v30   ;;  %775 = vperm.xlu1 %1611, %v665_v31  }
 0x284   : > { %770 = vperm.xlu0 %1610, %v664_v32  }
 0x28b   : > { %795 = vperm.xlu2 %1612, %v669_v36   ;;  %790 = vperm.xlu1 %1611, %v668_v37  }
 0x28c   : > { %785 = vperm.xlu0 %1610, %v667_v38  }
 0x293   : > { %810 = vperm.xlu2 %1612, %v672_v42   ;;  %805 = vperm.xlu1 %1611, %v671_v43  }
 0x294   : > { %800 = vperm.xlu0 %1610, %v670_v44  }
 0x29b   : > { %825 = vperm.xlu2 %1612, %v675_v48   ;;  %820 = vperm.xlu1 %1611, %v674_v49  }
 0x29c   : > { %815 = vperm.xlu0 %1610, %v673_v50  }
 0x2a3   : > { %835 = vperm.xlu1 %1611, %v677_v53  }
 0x2a4   : > { %830 = vperm.xlu0 %1610, %v676_v57  }
 0x2ad   : > { %v701_v58 = vpop.permute.xlu2 %700 }
 0x2ae   : > { %1613 = vrcp.f32 %v701_v58  ;;  %v909_v1 = vand.u32 2147483648, %v701_v58  ;;  %vm903_vm0 = vweird.f32 %v701_v58  ;;  %v907_v6 = vand.u32 2147483647, %v701_v58 }
 0x2b0   : > { %v910_v8 = vor.u32 1.1754944e-38, %v909_v1  ;;  %vm908_vm3 = vcmp.eq.f32.partialorder %v907_v6, 8.507059e+37 }
 0x2b4   : > { %v1614_v59 = vpop.eup %1613 }
 0x2b5   : > { %v899_v60 = vmul.f32 %v1614_v59, %v701_v58  ;;  %v706_v0 = vpop.permute.xlu2 %705  ;;  %vm904_vm1 = vweird.f32 %v1614_v59 }
 0x2b6   : > { %1615 = vrcp.f32 %v706_v0  ;;  %vm905_vm2 = vmor %vm903_vm0, %vm904_vm1  ;;  %vm918_vm4 = vweird.f32 %v706_v0  ;;  %v924_v28 = vand.u32 2147483648, %v706_v0  ;;  %v922_v30 = vand.u32 2147483647, %v706_v0 }
 0x2b7   : > { %v900_v2 = vsub.f32 1.0, %v899_v60 }
 0x2b8   : > { %v925_v32 = vor.u32 1.1754944e-38, %v924_v28  ;;  %vm923_vm7 = vcmp.eq.f32.partialorder %v922_v30, 8.507059e+37 }
 0x2b9   : > { %v901_v7 = vmul.f32 %v1614_v59, %v900_v2 }
 0x2bb   : > { %v902_v12 = vadd.f32 %v1614_v59, %v901_v7 }
 0x2bc   : > { %v1616_v13 = vpop.eup %1615 }
 0x2bd   : > { %v906_v14 = vsel %vm905_vm2, %v1614_v59, %v902_v12  ;;  %v914_v18 = vmul.f32 %v1616_v13, %v706_v0  ;;  %v721_v19 = vpop.permute.xlu2 %720  ;;  %vm919_vm5 = vweird.f32 %v1616_v13 }
 0x2be   : > { %v911_v20 = vsel %vm908_vm3, %v910_v8, %v906_v14  ;;  %1617 = vrcp.f32 %v721_v19  ;;  %vm920_vm6 = vmor %vm918_vm4, %vm919_vm5  ;;  %vm963_vm8 = vweird.f32 %v721_v19  ;;  %v967_v43 = vand.u32 2147483647, %v721_v19 }
 0x2bf   : > { %v912_v24 = vmul.f32 %v911_v20, %v1929_v54  ;;  %v915_v25 = vsub.f32 1.0, %v914_v18  ;;  %v969_v44 = vand.u32 2147483648, %v721_v19 }
 0x2c0   : > { %vm968_vm11 = vcmp.eq.f32.partialorder %v967_v43, 8.507059e+37 }
 0x2c1   : > { %1322 = vst [vmem:[#allocation2 + $0x20] sm:$0xff] %v912_v24  ;;  %v916_v31 = vmul.f32 %v1616_v13, %v915_v25  ;;  %v970_v50 = vor.u32 1.1754944e-38, %v969_v44 }
 0x2c3   : > { %v917_v35 = vadd.f32 %v1616_v13, %v916_v31 }
 0x2c4   : > { %v1618_v36 = vpop.eup %1617 }
 0x2c5   : > { %v921_v37 = vsel %vm920_vm6, %v1616_v13, %v917_v35  ;;  %v959_v38 = vmul.f32 %v1618_v36, %v721_v19  ;;  %v736_v40 = vpop.permute.xlu2 %735  ;;  %v2005_v41 = vpop.permute.xlu1 %690  ;;  %vm964_vm9 = vweird.f32 %v1618_v36 }
 0x2c6   : > { %v926_v42 = vsel %vm923_vm7, %v925_v32, %v921_v37  ;;  %1619 = vrcp.f32 %v736_v40  ;;  %v2007_v54 = vpop.permute.xlu0 %680  ;;  %v1012_v49 = vand.u32 2147483647, %v736_v40  ;;  %vm965_vm10 = vmor %vm963_vm8, %vm964_vm9  ;;  %v1014_v52 = vand.u32 2147483648, %v736_v40 }
 0x2c7   : > { %v927_v46 = vmul.f32 %v926_v42, %v1938_v61  ;;  %v960_v47 = vsub.f32 1.0, %v959_v38  ;;  %1621 = vrcp.f32 %v2005_v41  ;;  %vm1008_vm12 = vweird.f32 %v736_v40 }
 0x2c8   : > { %1623 = vrcp.f32 %v2007_v54  ;;  %vm2013_vm13 = vcmp.eq.f32.partialorder %v1012_v49, 8.507059e+37  ;;  %vm873_vm14 = vweird.f32 %v2005_v41  ;;  %v877_v6 = vand.u32 2147483647, %v2005_v41 }
 0x2c9   : > { %1323 = vst [vmem:[#allocation2 + $0x28] sm:$0xff] %v927_v46  ;;  %v961_v48 = vmul.f32 %v1618_v36, %v960_v47  ;;  %v1015_v14 = vor.u32 1.1754944e-38, %v1014_v52  ;;  %v879_v18 = vand.u32 2147483648, %v2005_v41  ;;  %vm843_vm15 = vweird.f32 %v2007_v54 }
 0x2ca   : > { %v847_v28 = vand.u32 2147483647, %v2007_v54  ;;  %v849_v25 = vand.u32 2147483648, %v2007_v54  ;;  %vm2034_vm2 = vcmp.eq.f32.partialorder %v877_v6, 8.507059e+37 }
 0x2cb   : > { %v962_v51 = vadd.f32 %v1618_v36, %v961_v48  ;;  %v880_v35 = vor.u32 1.1754944e-38, %v879_v18 }
 0x2cc   : > { %v1620_v53 = vpop.eup %1619  ;;  %vm2041_vm5 = vcmp.eq.f32.partialorder %v847_v28, 8.507059e+37  ;;  %v850_v46 = vor.u32 1.1754944e-38, %v849_v25 }
 0x2cd   : > { %v1622_v57 = vpop.eup %1621  ;;  %v966_v58 = vsel %vm965_vm10, %v1618_v36, %v962_v51  ;;  %v1004_v61 = vmul.f32 %v1620_v53, %v736_v40  ;;  %v2018_v60 = vpop.permute.xlu2 %750  ;;  %vm1009_vm0 = vweird.f32 %v1620_v53 }
 0x2ce   : > { %v2020_v0 = vpop.permute.xlu1 %695  ;;  %v971_v1 = vsel %vm968_vm11, %v970_v50, %v966_v58  ;;  %v869_v2 = vmul.f32 %v1622_v57, %v2005_v41  ;;  %1625 = vrcp.f32 %v2018_v60  ;;  %v2025_v7 = vpop.permute.xlu0 %685  ;;  %vm874_vm1 = vweird.f32 %v1622_v57  ;;  %vm1010_vm3 = vmor %vm1008_vm12, %vm1009_vm0 }
 0x2cf   : > { %v1624_v8 = vpop.eup %1623  ;;  %v972_v12 = vmul.f32 %v971_v1, %v1947_v3  ;;  %v1005_v13 = vsub.f32 1.0, %v1004_v61  ;;  %1627 = vrcp.f32 %v2020_v0  ;;  %v1057_v36 = vand.u32 2147483647, %v2018_v60  ;;  %vm875_vm6 = vmor %vm873_vm14, %vm874_vm1 }
 0x2d0   : > { %v870_v19 = vsub.f32 1.0, %v869_v2  ;;  %v839_v20 = vmul.f32 %v1624_v8, %v2007_v54  ;;  %1629 = vrcp.f32 %v2025_v7  ;;  %vm844_vm4 = vweird.f32 %v1624_v8 }
 0x2d1   : > { %1326 = vst [vmem:[#allocation2 + $0x40] sm:$0xff] %v972_v12  ;;  %v1006_v24 = vmul.f32 %v1620_v53, %v1005_v13  ;;  %vm1053_vm7 = vweird.f32 %v2018_v60  ;;  %v1059_v52 = vand.u32 2147483648, %v2018_v60  ;;  %vm845_vm8 = vmor %vm843_vm15, %vm844_vm4  ;;  %vm2064_vm9 = vcmp.eq.f32.partialorder %v1057_v36, 8.507059e+37 }
 0x2d2   : > { %v871_v30 = vmul.f32 %v1622_v57, %v870_v19  ;;  %v840_v31 = vsub.f32 1.0, %v839_v20  ;;  %v892_v12 = vand.u32 2147483647, %v2020_v0  ;;  %v894_v20 = vand.u32 2147483648, %v2020_v0 }
 0x2d3   : > { %v1007_v32 = vadd.f32 %v1620_v53, %v1006_v24  ;;  %v1060_v18 = vor.u32 1.1754944e-38, %v1059_v52  ;;  %v862_v28 = vand.u32 2147483647, %v2025_v7  ;;  %v864_v24 = vand.u32 2147483648, %v2025_v7 }
 0x2d4   : > { %v1626_v37 = vpop.eup %1625  ;;  %v872_v38 = vadd.f32 %v1622_v57, %v871_v30  ;;  %v841_v42 = vmul.f32 %v1624_v8, %v840_v31  ;;  %vm2083_vm14 = vcmp.eq.f32.partialorder %v892_v12, 8.507059e+37  ;;  %vm858_vm15 = vweird.f32 %v2025_v7 }
 0x2d5   : > { %v1011_v44 = vsel %vm1010_vm3, %v1620_v53, %v1007_v32  ;;  %v1049_v47 = vmul.f32 %v1626_v37, %v2018_v60  ;;  %v2049_v48 = vpop.permute.xlu2 %765  ;;  %v1628_v41 = vpop.eup %1627  ;;  %vm1054_vm10 = vweird.f32 %v1626_v37 }
 0x2d6   : > { %v2051_v40 = vpop.permute.xlu1 %715  ;;  %v1016_v49 = vsel %vm2013_vm13, %v1015_v14, %v1011_v44  ;;  %v876_v50 = vsel %vm875_vm6, %v1622_v57, %v872_v38  ;;  %v842_v51 = vadd.f32 %v1624_v8, %v841_v42  ;;  %v2056_v53 = vpop.permute.xlu0 %710  ;;  %v884_v6 = vmul.f32 %v1628_v41, %v2020_v0  ;;  %vm1055_vm11 = vmor %vm1053_vm7, %vm1054_vm10 }
 0x2d7   : > { %v1017_v58 = vmul.f32 %v1016_v49, %v1956_v9  ;;  %v881_v61 = vsel %vm2034_vm2, %v880_v35, %v876_v50  ;;  %v1050_v1 = vsub.f32 1.0, %v1049_v47  ;;  %v1630_v9 = vpop.eup %1629  ;;  %1631 = vrcp.f32 %v2049_v48 }
 0x2d8   : > { %v882_v57 = vmul.f32 %v881_v61, %v1931_v55  ;;  %v846_v2 = vsel %vm845_vm8, %v1624_v8, %v842_v51  ;;  %v885_v19 = vsub.f32 1.0, %v884_v6  ;;  %v854_v55 = vmul.f32 %v1630_v9, %v2025_v7 }
 0x2d9   : > { %1329 = vst [vmem:[#allocation2 + $0x58] sm:$0xff] %v1017_v58  ;;  %v851_v13 = vsel %vm2041_vm5, %v850_v46, %v846_v2  ;;  %v1051_v14 = vmul.f32 %v1626_v37, %v1050_v1  ;;  %vm889_vm12 = vweird.f32 %v1628_v41  ;;  %1633 = vrcp.f32 %v2051_v40 }
 0x2da   : > { %1320 = vst [vmem:[#allocation2 + $0x10] sm:$0xff] %v882_v57  ;;  %v852_v54 = vmul.f32 %v851_v13, %v1933_v56  ;;  %v886_v25 = vmul.f32 %v1628_v41, %v885_v19  ;;  %v855_v30 = vsub.f32 1.0, %v854_v55  ;;  %vm888_vm13 = vweird.f32 %v2020_v0 }
 0x2db   : > { %v1052_v8 = vadd.f32 %v1626_v37, %v1051_v14  ;;  %vm859_vm0 = vweird.f32 %v1630_v9  ;;  %vm890_vm1 = vmor %vm888_vm13, %vm889_vm12  ;;  %v895_v0 = vor.u32 1.1754944e-38, %v894_v20  ;;  %vm2096_vm2 = vcmp.eq.f32.partialorder %v862_v28, 8.507059e+37 }
 0x2dc   : > { %1318 = vst [vmem:[#allocation2] sm:$0xff] %v852_v54  ;;  %v887_v32 = vadd.f32 %v1628_v41, %v886_v25  ;;  %v856_v35 = vmul.f32 %v1630_v9, %v855_v30  ;;  %1635 = vrcp.f32 %v2056_v53  ;;  %v865_v47 = vor.u32 1.1754944e-38, %v864_v24  ;;  %vm860_vm3 = vmor %vm858_vm15, %vm859_vm0 }
 0x2dd   : > { %v1056_v56 = vsel %vm1055_vm11, %v1626_v37, %v1052_v8  ;;  %v1632_v38 = vpop.eup %1631  ;;  %v2101_v43 = vpop.permute.xlu2 %780  ;;  %v1102_v50 = vand.u32 2147483647, %v2049_v48  ;;  %v1104_v51 = vand.u32 2147483648, %v2049_v48  ;;  %v952_v52 = vand.u32 2147483647, %v2051_v40 }
 0x2de   : > { %v2088_v31 = vpop.permute.xlu1 %730  ;;  %v1061_v60 = vsel %vm2064_vm9, %v1060_v18, %v1056_v56  ;;  %v2092_v36 = vpop.permute.xlu0 %725  ;;  %v891_v44 = vsel %vm890_vm1, %v1628_v41, %v887_v32  ;;  %v857_v46 = vadd.f32 %v1630_v9, %v856_v35  ;;  %v1094_v49 = vmul.f32 %v1632_v38, %v2049_v48 }
 0x2df   : > { %v1062_v37 = vmul.f32 %v1061_v60, %v1965_v15  ;;  %v896_v15 = vsel %vm2083_vm14, %v895_v0, %v891_v44  ;;  %v1634_v58 = vpop.eup %1633  ;;  %1637 = vrcp.f32 %v2101_v43  ;;  %vm1098_vm4 = vweird.f32 %v2049_v48 }
 0x2e0   : > { %v897_v41 = vmul.f32 %v896_v15, %v1940_v62  ;;  %v861_v61 = vsel %vm860_vm3, %v1630_v9, %v857_v46  ;;  %v1095_v1 = vsub.f32 1.0, %v1094_v49  ;;  %v944_v7 = vmul.f32 %v1634_v58, %v2051_v40 }
 0x2e1   : > { %1332 = vst [vmem:[#allocation2 + $0x70] sm:$0xff] %v1062_v37  ;;  %v866_v59 = vsel %vm2096_vm2, %v865_v47, %v861_v61  ;;  %vm948_vm5 = vweird.f32 %v2051_v40  ;;  %vm1099_vm6 = vweird.f32 %v1632_v38  ;;  %v954_v62 = vand.u32 2147483648, %v2051_v40 }
 0x2e2   : > { %1321 = vst [vmem:[#allocation2 + $0x18] sm:$0xff] %v897_v41  ;;  %v867_v57 = vmul.f32 %v866_v59, %v1942_v63  ;;  %v1096_v2 = vmul.f32 %v1632_v38, %v1095_v1  ;;  %v1636_v6 = vpop.eup %1635  ;;  %vm2121_vm7 = vcmp.eq.f32.partialorder %v1102_v50, 8.507059e+37  ;;  %v945_v9 = vsub.f32 1.0, %v944_v7  ;;  %vm1100_vm9 = vmor %vm1098_vm4, %vm1099_vm6 }
 0x2e3   : > { %v937_v13 = vand.u32 2147483647, %v2056_v53  ;;  %1639 = vrcp.f32 %v2088_v31  ;;  %v1105_v18 = vor.u32 1.1754944e-38, %v1104_v51  ;;  %vm2129_vm8 = vcmp.eq.f32.partialorder %v952_v52, 8.507059e+37 }
 0x2e4   : > { %1319 = vst [vmem:[#allocation2 + $0x8] sm:$0xff] %v867_v57  ;;  %v1097_v54 = vadd.f32 %v1632_v38, %v1096_v2  ;;  %v929_v19 = vmul.f32 %v1636_v6, %v2056_v53  ;;  %v946_v8 = vmul.f32 %v1634_v58, %v945_v9  ;;  %vm949_vm10 = vweird.f32 %v1634_v58 }
 0x2e5   : > { %vm933_vm11 = vweird.f32 %v2056_v53  ;;  %v939_v20 = vand.u32 2147483648, %v2056_v53  ;;  %v1638_v28 = vpop.eup %1637  ;;  %v955_v25 = vor.u32 1.1754944e-38, %v954_v62  ;;  %1641 = vrcp.f32 %v2092_v36  ;;  %vm950_vm13 = vmor %vm948_vm5, %vm949_vm10  ;;  %v2152_v37 = vpop.permute.xlu2 %795 }
 0x2e6   : > { %v2127_v14 = vpop.permute.xlu1 %745  ;;  %v2134_v55 = vpop.permute.xlu0 %740  ;;  %v1101_v24 = vsel %vm1100_vm9, %v1632_v38, %v1097_v54  ;;  %v930_v30 = vsub.f32 1.0, %v929_v19  ;;  %v947_v3 = vadd.f32 %v1634_v58, %v946_v8  ;;  %vm2143_vm12 = vcmp.eq.f32.partialorder %v937_v13, 8.507059e+37 }
 0x2e7   : > { %v1106_v56 = vsel %vm2121_vm7, %v1105_v18, %v1101_v24  ;;  %v1139_v48 = vmul.f32 %v1638_v28, %v2101_v43  ;;  %vm934_vm14 = vweird.f32 %v1636_v6  ;;  %v1149_v38 = vand.u32 2147483648, %v2101_v43 }
 0x2e8   : > { %v1107_v32 = vmul.f32 %v1106_v56, %v1974_v23  ;;  %v931_v35 = vmul.f32 %v1636_v6, %v930_v30  ;;  %v951_v42 = vsel %vm950_vm13, %v1634_v58, %v947_v3  ;;  %v940_v44 = vor.u32 1.1754944e-38, %v939_v20  ;;  %vm935_vm0 = vmor %vm933_vm11, %vm934_vm14 }
 0x2e9   : > { %v1640_v0 = vpop.eup %1639  ;;  %v1140_v46 = vsub.f32 1.0, %v1139_v48  ;;  %vm1143_vm15 = vweird.f32 %v2101_v43  ;;  %v956_v47 = vsel %vm2129_vm8, %v955_v25, %v951_v42  ;;  %v1147_v40 = vand.u32 2147483647, %v2101_v43 }
 0x2ea   : > { %1335 = vst [vmem:[#allocation2 + $0x88] sm:$0xff] %v1107_v32  ;;  %v932_v23 = vadd.f32 %v1636_v6, %v931_v35  ;;  %v989_v49 = vmul.f32 %v1640_v0, %v2088_v31  ;;  %v957_v15 = vmul.f32 %v956_v47, %v1949_v4  ;;  %vm1144_vm1 = vweird.f32 %v1638_v28 }
 0x2eb   : > { %v1141_v50 = vmul.f32 %v1638_v28, %v1140_v46  ;;  %vm993_vm2 = vweird.f32 %v2088_v31  ;;  %v1642_v52 = vpop.eup %1641  ;;  %v1150_v41 = vor.u32 1.1754944e-38, %v1149_v38  ;;  %1643 = vrcp.f32 %v2152_v37  ;;  %vm1145_vm3 = vmor %vm1143_vm15, %vm1144_vm1 }
 0x2ec   : > { %v936_v58 = vsel %vm935_vm0, %v1636_v6, %v932_v23  ;;  %v990_v61 = vsub.f32 1.0, %v989_v49  ;;  %1325 = vst [vmem:[#allocation2 + $0x38] sm:$0xff] %v957_v15  ;;  %v999_v53 = vand.u32 2147483648, %v2088_v31  ;;  %v974_v59 = vmul.f32 %v1642_v52, %v2092_v36 }
 0x2ed   : > { %v941_v1 = vsel %vm2143_vm12, %v940_v44, %v936_v58  ;;  %v1142_v4 = vadd.f32 %v1638_v28, %v1141_v50  ;;  %vm994_vm4 = vweird.f32 %v1640_v0  ;;  %v997_v62 = vand.u32 2147483647, %v2088_v31 }
 0x2ee   : > { %v2163_v51 = vpop.permute.xlu1 %760  ;;  %v2170_v7 = vpop.permute.xlu0 %755  ;;  %v942_v57 = vmul.f32 %v941_v1, %v1951_v5  ;;  %v991_v2 = vmul.f32 %v1640_v0, %v990_v61  ;;  %vm1148_vm5 = vcmp.eq.f32.partialorder %v1147_v40, 8.507059e+37  ;;  %v975_v12 = vsub.f32 1.0, %v974_v59  ;;  %vm995_vm6 = vmor %vm993_vm2, %vm994_vm4 }
 0x2ef   : > { %v1146_v6 = vsel %vm1145_vm3, %v1638_v28, %v1142_v4  ;;  %1645 = vrcp.f32 %v2127_v14  ;;  %v982_v54 = vand.u32 2147483647, %v2092_v36  ;;  %v984_v5 = vand.u32 2147483648, %v2092_v36  ;;  %v2185_v28 = vpop.permute.xlu2 %810 }
 0x2f0   : > { %1324 = vst [vmem:[#allocation2 + $0x30] sm:$0xff] %v942_v57  ;;  %v1151_v9 = vsel %vm1148_vm5, %v1150_v41, %v1146_v6  ;;  %v992_v13 = vadd.f32 %v1640_v0, %v991_v2  ;;  %v1000_v43 = vor.u32 1.1754944e-38, %v999_v53  ;;  %v976_v63 = vmul.f32 %v1642_v52, %v975_v12 }
 0x2f1   : > { %v1152_v18 = vmul.f32 %v1151_v9, %v1983_v26  ;;  %vm979_vm7 = vweird.f32 %v1642_v52  ;;  %v1644_v19 = vpop.eup %1643  ;;  %vm998_vm8 = vcmp.eq.f32.partialorder %v997_v62, 8.507059e+37  ;;  %v1192_v20 = vand.u32 2147483647, %v2152_v37 }
 0x2f2   : > { %v996_v8 = vsel %vm995_vm6, %v1640_v0, %v992_v13  ;;  %1647 = vrcp.f32 %v2134_v55  ;;  %v977_v25 = vadd.f32 %v1642_v52, %v976_v63  ;;  %vm978_vm9 = vweird.f32 %v2092_v36 }
 0x2f3   : > { %1338 = vst [vmem:[#allocation2 + $0xa0] sm:$0xff] %v1152_v18  ;;  %v1001_v24 = vsel %vm998_vm8, %v1000_v43, %v996_v8  ;;  %v1184_v26 = vmul.f32 %v1644_v19, %v2152_v37  ;;  %vm980_vm10 = vmor %vm978_vm9, %vm979_vm7  ;;  %vm983_vm11 = vcmp.eq.f32.partialorder %v982_v54, 8.507059e+37  ;;  %v985_v30 = vor.u32 1.1754944e-38, %v984_v5 }
 0x2f4   : > { %v1002_v31 = vmul.f32 %v1001_v24, %v1958_v10  ;;  %vm1188_vm12 = vweird.f32 %v2152_v37  ;;  %v981_v60 = vsel %vm980_vm10, %v1642_v52, %v977_v25  ;;  %v1194_v32 = vand.u32 2147483648, %v2152_v37 }
 0x2f5   : > { %v1646_v3 = vpop.eup %1645  ;;  %v1185_v48 = vsub.f32 1.0, %v1184_v26  ;;  %1649 = vrcp.f32 %v2185_v28  ;;  %v986_v36 = vsel %vm983_vm11, %v985_v30, %v981_v60  ;;  %vm2195_vm13 = vcmp.eq.f32.partialorder %v1192_v20, 8.507059e+37 }
 0x2f6   : > { %v2191_v56 = vpop.permute.xlu1 %775  ;;  %1328 = vst [vmem:[#allocation2 + $0x50] sm:$0xff] %v1002_v31  ;;  %v1034_v10 = vmul.f32 %v1646_v3, %v2127_v14  ;;  %v1042_v38 = vand.u32 2147483647, %v2127_v14  ;;  %v987_v0 = vmul.f32 %v986_v36, %v1960_v11  ;;  %vm1189_vm14 = vweird.f32 %v1644_v19  ;;  %v2203_v46 = vpop.permute.xlu0 %770 }
 0x2f7   : > { %v1186_v42 = vmul.f32 %v1644_v19, %v1185_v48  ;;  %v1044_v44 = vand.u32 2147483648, %v2127_v14  ;;  %vm1038_vm15 = vweird.f32 %v2127_v14  ;;  %v1027_v40 = vand.u32 2147483647, %v2134_v55  ;;  %vm1190_vm1 = vmor %vm1188_vm12, %vm1189_vm14  ;;  %v2230_v5 = vpop.permute.xlu2 %825 }
 0x2f8   : > { %v1648_v47 = vpop.eup %1647  ;;  %v1035_v23 = vsub.f32 1.0, %v1034_v10  ;;  %1651 = vrcp.f32 %v2163_v51  ;;  %1327 = vst [vmem:[#allocation2 + $0x48] sm:$0xff] %v987_v0  ;;  %v1195_v15 = vor.u32 1.1754944e-38, %v1194_v32  ;;  %vm1023_vm0 = vweird.f32 %v2134_v55 }
 0x2f9   : > { %v1187_v49 = vadd.f32 %v1644_v19, %v1186_v42  ;;  %v1019_v50 = vmul.f32 %v1648_v47, %v2134_v55  ;;  %vm1039_vm2 = vweird.f32 %v1646_v3  ;;  %vm2212_vm3 = vcmp.eq.f32.partialorder %v1042_v38, 8.507059e+37 }
 0x2fa   : > { %v1036_v11 = vmul.f32 %v1646_v3, %v1035_v23  ;;  %v1029_v58 = vand.u32 2147483648, %v2134_v55  ;;  %v1045_v1 = vor.u32 1.1754944e-38, %v1044_v44  ;;  %1653 = vrcp.f32 %v2170_v7  ;;  %vm1040_vm5 = vmor %vm1038_vm15, %vm1039_vm2 }
 0x2fb   : > { %v1650_v41 = vpop.eup %1649  ;;  %v1191_v61 = vsel %vm1190_vm1, %v1644_v19, %v1187_v49  ;;  %v1020_v4 = vsub.f32 1.0, %v1019_v50  ;;  %vm2220_vm4 = vcmp.eq.f32.partialorder %v1027_v40, 8.507059e+37  ;;  %vm1024_vm6 = vweird.f32 %v1648_v47 }
 0x2fc   : > { %v1196_v53 = vsel %vm2195_vm13, %v1195_v15, %v1191_v61  ;;  %v1037_v59 = vadd.f32 %v1646_v3, %v1036_v11  ;;  %v1229_v57 = vmul.f32 %v1650_v41, %v2185_v28  ;;  %v1239_v6 = vand.u32 2147483648, %v2185_v28  ;;  %vm1025_vm8 = vmor %vm1023_vm0, %vm1024_vm6 }
 0x2fd   : > { %v1197_v2 = vmul.f32 %v1196_v53, %v1992_v33  ;;  %v1021_v62 = vmul.f32 %v1648_v47, %v1020_v4  ;;  %v1030_v13 = vor.u32 1.1754944e-38, %v1029_v58  ;;  %vm1233_vm7 = vweird.f32 %v2185_v28 }
 0x2fe   : > { %v1652_v12 = vpop.eup %1651  ;;  %v1041_v9 = vsel %vm1040_vm5, %v1646_v3, %v1037_v59  ;;  %v1230_v54 = vsub.f32 1.0, %v1229_v57  ;;  %v2232_v18 = vpop.permute.xlu1 %790  ;;  %v1237_v43 = vand.u32 2147483647, %v2185_v28  ;;  %vm1234_vm9 = vweird.f32 %v1650_v41 }
 0x2ff   : > { %1341 = vst [vmem:[#allocation2 + $0xb8] sm:$0xff] %v1197_v2  ;;  %v1046_v33 = vsel %vm2212_vm3, %v1045_v1, %v1041_v9  ;;  %v1022_v14 = vadd.f32 %v1648_v47, %v1021_v62  ;;  %v1079_v63 = vmul.f32 %v1652_v12, %v2163_v51  ;;  %vm1083_vm10 = vweird.f32 %v2163_v51  ;;  %v2244_v31 = vpop.permute.xlu0 %785  ;;  %vm1235_vm11 = vmor %vm1233_vm7, %vm1234_vm9 }
 0x300   : > { %v1047_v19 = vmul.f32 %v1046_v33, %v1967_v16  ;;  %v1231_v8 = vmul.f32 %v1650_v41, %v1230_v54  ;;  %v1654_v20 = vpop.eup %1653  ;;  %v1240_v25 = vor.u32 1.1754944e-38, %v1239_v6  ;;  %1655 = vrcp.f32 %v2230_v5 }
 0x301   : > { %v1026_v24 = vsel %vm1025_vm8, %v1648_v47, %v1022_v14  ;;  %v1080_v26 = vsub.f32 1.0, %v1079_v63  ;;  %v1089_v55 = vand.u32 2147483648, %v2163_v51  ;;  %v1064_v3 = vmul.f32 %v1654_v20, %v2170_v7 }
 0x302   : > { %1331 = vst [vmem:[#allocation2 + $0x68] sm:$0xff] %v1047_v19  ;;  %v1031_v16 = vsel %vm2220_vm4, %v1030_v13, %v1026_v24  ;;  %v1232_v30 = vadd.f32 %v1650_v41, %v1231_v8  ;;  %vm1084_vm12 = vweird.f32 %v1652_v12  ;;  %v1087_v32 = vand.u32 2147483647, %v2163_v51 }
 0x303   : > { %v1032_v60 = vmul.f32 %v1031_v16, %v1969_v17  ;;  %v1081_v48 = vmul.f32 %v1652_v12, %v1080_v26  ;;  %vm1238_vm13 = vcmp.eq.f32.partialorder %v1237_v43, 8.507059e+37  ;;  %v1065_v35 = vsub.f32 1.0, %v1064_v3  ;;  %vm1085_vm14 = vmor %vm1083_vm10, %vm1084_vm12 }
 0x304   : > { %v1236_v36 = vsel %vm1235_vm11, %v1650_v41, %v1232_v30  ;;  %1657 = vrcp.f32 %v2191_v56  ;;  %v1072_v0 = vand.u32 2147483647, %v2170_v7  ;;  %v1074_v42 = vand.u32 2147483648, %v2170_v7 }
 0x305   : > { %1330 = vst [vmem:[#allocation2 + $0x60] sm:$0xff] %v1032_v60  ;;  %v1241_v10 = vsel %vm1238_vm13, %v1240_v25, %v1236_v36  ;;  %v1082_v38 = vadd.f32 %v1652_v12, %v1081_v48  ;;  %v1090_v28 = vor.u32 1.1754944e-38, %v1089_v55  ;;  %v1066_v44 = vmul.f32 %v1654_v20, %v1065_v35 }
 0x306   : > { %v1242_v17 = vmul.f32 %v1241_v10, %v1998_v39  ;;  %vm1069_vm15 = vweird.f32 %v1654_v20  ;;  %v1656_v47 = vpop.eup %1655  ;;  %vm1088_vm0 = vcmp.eq.f32.partialorder %v1087_v32, 8.507059e+37  ;;  %v1282_v40 = vand.u32 2147483647, %v2230_v5  ;;  %v2264_v50 = vpop.permute.xlu1 %805 }
 0x307   : > { %v1086_v23 = vsel %vm1085_vm14, %v1652_v12, %v1082_v38  ;;  %1659 = vrcp.f32 %v2203_v46  ;;  %v1067_v15 = vadd.f32 %v1654_v20, %v1066_v44  ;;  %vm1068_vm1 = vweird.f32 %v2170_v7  ;;  %v2276_v53 = vpop.permute.xlu0 %800 }
 0x308   : > { %1344 = vst [vmem:[#allocation2 + $0xd0] sm:$0xff] %v1242_v17  ;;  %v1091_v49 = vsel %vm1088_vm0, %v1090_v28, %v1086_v23  ;;  %v1274_v39 = vmul.f32 %v1656_v47, %v2230_v5  ;;  %vm1070_vm2 = vmor %vm1068_vm1, %vm1069_vm15  ;;  %vm1073_vm3 = vcmp.eq.f32.partialorder %v1072_v0, 8.507059e+37  ;;  %v1075_v11 = vor.u32 1.1754944e-38, %v1074_v42 }
 0x309   : > { %v1092_v51 = vmul.f32 %v1091_v49, %v1976_v21  ;;  %vm1278_vm4 = vweird.f32 %v2230_v5  ;;  %v1071_v58 = vsel %vm1070_vm2, %v1654_v20, %v1067_v15  ;;  %v1284_v61 = vand.u32 2147483648, %v2230_v5 }
 0x30a   : > { %v1658_v52 = vpop.eup %1657  ;;  %v1275_v41 = vsub.f32 1.0, %v1274_v39  ;;  %1661 = vrcp.f32 %v2232_v18  ;;  %v1076_v7 = vsel %vm1073_vm3, %v1075_v11, %v1071_v58  ;;  %vm2270_vm5 = vcmp.eq.f32.partialorder %v1282_v40, 8.507059e+37 }
 0x30b   : > { %1334 = vst [vmem:[#allocation2 + $0x80] sm:$0xff] %v1092_v51  ;;  %v1124_v21 = vmul.f32 %v1658_v52, %v2191_v56  ;;  %v1132_v4 = vand.u32 2147483647, %v2191_v56  ;;  %v1077_v59 = vmul.f32 %v1076_v7, %v1978_v22  ;;  %vm1279_vm6 = vweird.f32 %v1656_v47 }
 0x30c   : > { %v1276_v37 = vmul.f32 %v1656_v47, %v1275_v41  ;;  %v1134_v57 = vand.u32 2147483648, %v2191_v56  ;;  %vm1128_vm7 = vweird.f32 %v2191_v56  ;;  %v1117_v6 = vand.u32 2147483647, %v2203_v46  ;;  %vm1280_vm9 = vmor %vm1278_vm4, %vm1279_vm6 }
 0x30d   : > { %v1660_v2 = vpop.eup %1659  ;;  %v1125_v62 = vsub.f32 1.0, %v1124_v21  ;;  %1663 = vrcp.f32 %v2244_v31  ;;  %1333 = vst [vmem:[#allocation2 + $0x78] sm:$0xff] %v1077_v59  ;;  %v1285_v9 = vor.u32 1.1754944e-38, %v1284_v61  ;;  %vm1113_vm8 = vweird.f32 %v2203_v46  ;;  %v1677_v59 = vld [vmem:[#allocation2 + $0xa8] sm:$0xff] }
 0x30e   : > { %v1277_v12 = vadd.f32 %v1656_v47, %v1276_v37  ;;  %v1109_v13 = vmul.f32 %v1660_v2, %v2203_v46  ;;  %vm1129_vm10 = vweird.f32 %v1658_v52  ;;  %vm2287_vm11 = vcmp.eq.f32.partialorder %v1132_v4, 8.507059e+37  ;;  %v2304_v30 = vpop.permute.xlu1 %820 }
 0x30f   : > { %v1126_v22 = vmul.f32 %v1658_v52, %v1125_v62  ;;  %v1119_v33 = vand.u32 2147483648, %v2203_v46  ;;  %v1135_v63 = vor.u32 1.1754944e-38, %v1134_v57  ;;  %1665 = vrcp.f32 %v2264_v50  ;;  %vm1130_vm13 = vmor %vm1128_vm7, %vm1129_vm10  ;;  %v2315_v38 = vpop.permute.xlu0 %815 }
 0x310   : > { %v1662_v14 = vpop.eup %1661  ;;  %v1281_v43 = vsel %vm1280_vm9, %v1656_v47, %v1277_v12  ;;  %v1110_v19 = vsub.f32 1.0, %v1109_v13  ;;  %vm2295_vm12 = vcmp.eq.f32.partialorder %v1117_v6, 8.507059e+37  ;;  %vm1114_vm14 = vweird.f32 %v1660_v2 }
 0x311   : > { %v1286_v8 = vsel %vm2270_vm5, %v1285_v9, %v1281_v43  ;;  %v1127_v20 = vadd.f32 %v1658_v52, %v1126_v22  ;;  %v1169_v24 = vmul.f32 %v1662_v14, %v2232_v18  ;;  %v1179_v16 = vand.u32 2147483648, %v2232_v18  ;;  %vm1115_vm0 = vmor %vm1113_vm8, %vm1114_vm14  ;;  %v1678_v22 = vld [vmem:[#allocation2 + $0xc8] sm:$0xff] }
 0x312   : > { %v1287_v25 = vmul.f32 %v1286_v8, %v2001_v45  ;;  %v1111_v26 = vmul.f32 %v1660_v2, %v1110_v19  ;;  %v1120_v60 = vor.u32 1.1754944e-38, %v1119_v33  ;;  %vm1173_vm15 = vweird.f32 %v2232_v18 }
 0x313   : > { %v1664_v55 = vpop.eup %1663  ;;  %v1131_v3 = vsel %vm1130_vm13, %v1658_v52, %v1127_v20  ;;  %v1170_v48 = vsub.f32 1.0, %v1169_v24  ;;  %v1177_v56 = vand.u32 2147483647, %v2232_v18  ;;  %vm1174_vm1 = vweird.f32 %v1662_v14 }
 0x314   : > { %1347 = vst [vmem:[#allocation2 + $0xe8] sm:$0xff] %v1287_v25  ;;  %v1136_v32 = vsel %vm2287_vm11, %v1135_v63, %v1131_v3  ;;  %v1112_v45 = vadd.f32 %v1660_v2, %v1111_v26  ;;  %v1154_v36 = vmul.f32 %v1664_v55, %v2244_v31  ;;  %vm1158_vm2 = vweird.f32 %v2244_v31  ;;  %vm1175_vm3 = vmor %vm1173_vm15, %vm1174_vm1 }
 0x315   : > { %v1137_v35 = vmul.f32 %v1136_v32, %v1985_v27  ;;  %v1171_v10 = vmul.f32 %v1662_v14, %v1170_v48  ;;  %v1666_v0 = vpop.eup %1665  ;;  %v1180_v17 = vor.u32 1.1754944e-38, %v1179_v16  ;;  %1667 = vrcp.f32 %v2276_v53  ;;  %v1679_v32 = vld [vmem:[#allocation2 + $0xc0] sm:$0xff] }
 0x316   : > { %v1116_v42 = vsel %vm1115_vm0, %v1660_v2, %v1112_v45  ;;  %v1155_v28 = vsub.f32 1.0, %v1154_v36  ;;  %v1164_v46 = vand.u32 2147483648, %v2244_v31  ;;  %v1214_v47 = vmul.f32 %v1666_v0, %v2264_v50  ;;  %v2333_v1 = vpop.permute.xlu1 %835 }
 0x317   : > { %1337 = vst [vmem:[#allocation2 + $0x98] sm:$0xff] %v1137_v35  ;;  %v1121_v44 = vsel %vm2295_vm12, %v1120_v60, %v1116_v42  ;;  %v1172_v27 = vadd.f32 %v1662_v14, %v1171_v10  ;;  %vm1159_vm4 = vweird.f32 %v1664_v55  ;;  %v1162_v49 = vand.u32 2147483647, %v2244_v31  ;;  %v2339_v12 = vpop.permute.xlu0 %830 }
 0x318   : > { %v1122_v23 = vmul.f32 %v1121_v44, %v1987_v29  ;;  %v1156_v40 = vmul.f32 %v1664_v55, %v1155_v28  ;;  %vm1178_vm5 = vcmp.eq.f32.partialorder %v1177_v56, 8.507059e+37  ;;  %v1215_v39 = vsub.f32 1.0, %v1214_v47  ;;  %vm1160_vm6 = vmor %vm1158_vm2, %vm1159_vm4 }
 0x319   : > { %v1176_v15 = vsel %vm1175_vm3, %v1662_v14, %v1172_v27  ;;  %1669 = vrcp.f32 %v2304_v30  ;;  %v1222_v52 = vand.u32 2147483647, %v2264_v50  ;;  %v1224_v58 = vand.u32 2147483648, %v2264_v50 }
 0x31a   : > { %1336 = vst [vmem:[#allocation2 + $0x90] sm:$0xff] %v1122_v23  ;;  %v1181_v51 = vsel %vm1178_vm5, %v1180_v17, %v1176_v15  ;;  %v1157_v11 = vadd.f32 %v1664_v55, %v1156_v40  ;;  %v1165_v18 = vor.u32 1.1754944e-38, %v1164_v46  ;;  %v1216_v41 = vmul.f32 %v1666_v0, %v1215_v39  ;;  %v1680_v46 = vld [vmem:[#allocation2 + $0xe0] sm:$0xff] }
 0x31b   : > { %v1182_v29 = vmul.f32 %v1181_v51, %v1994_v34  ;;  %vm1219_vm7 = vweird.f32 %v1666_v0  ;;  %v1668_v61 = vpop.eup %1667  ;;  %vm1163_vm8 = vcmp.eq.f32.partialorder %v1162_v49, 8.507059e+37  ;;  %1671 = vrcp.f32 %v2315_v38 }
 0x31c   : > { %v1161_v7 = vsel %vm1160_vm6, %v1664_v55, %v1157_v11  ;;  %v1217_v4 = vadd.f32 %v1666_v0, %v1216_v41  ;;  %vm1218_vm9 = vweird.f32 %v2264_v50  ;;  %v1199_v34 = vmul.f32 %v1668_v61, %v2276_v53 }
 0x31d   : > { %1340 = vst [vmem:[#allocation2 + $0xb0] sm:$0xff] %v1182_v29  ;;  %v1166_v21 = vsel %vm1163_vm8, %v1165_v18, %v1161_v7  ;;  %vm1220_vm10 = vmor %vm1218_vm9, %vm1219_vm7  ;;  %vm1223_vm11 = vcmp.eq.f32.partialorder %v1222_v52, 8.507059e+37  ;;  %v1225_v37 = vor.u32 1.1754944e-38, %v1224_v58  ;;  %v1207_v6 = vand.u32 2147483647, %v2276_v53  ;;  %v1681_v52 = vld [vmem:[#allocation2 + $0xd8] sm:$0xff] }
 0x31e   : > { %v1167_v31 = vmul.f32 %v1677_v59, %v1166_v21  ;;  %v1221_v2 = vsel %vm1220_vm10, %v1666_v0, %v1217_v4  ;;  %v1200_v62 = vsub.f32 1.0, %v1199_v34  ;;  %1673 = vrcp.f32 %v2333_v1  ;;  %v1682_v7 = vld [vmem:[#allocation2 + $0xf8] sm:$0xff]  ;;  %v1683_v59 = vld [vmem:[#allocation2 + $0xf0] sm:$0xff] }
 0x31f   : > { %v1670_v57 = vpop.eup %1669  ;;  %v1226_v9 = vsel %vm1223_vm11, %v1225_v37, %v1221_v2  ;;  %v1209_v50 = vand.u32 2147483648, %v2276_v53  ;;  %vm1204_vm12 = vweird.f32 %v1668_v61  ;;  %vm1203_vm13 = vweird.f32 %v2276_v53 }
 0x320   : > { %1339 = vst [vmem:[#allocation2 + $0xa8] sm:$0xff] %v1167_v31  ;;  %v1259_v13 = vmul.f32 %v1670_v57, %v2304_v30  ;;  %v1227_v54 = vmul.f32 %v1678_v22, %v1226_v9  ;;  %v1201_v33 = vmul.f32 %v1668_v61, %v1200_v62  ;;  %v1269_v63 = vand.u32 2147483648, %v2304_v30  ;;  %vm1205_vm0 = vmor %vm1203_vm13, %vm1204_vm12 }
 0x321   : > { %v1672_v14 = vpop.eup %1671  ;;  %1675 = vrcp.f32 %v2339_v12  ;;  %vm1208_vm14 = vcmp.eq.f32.partialorder %v1207_v6, 8.507059e+37  ;;  %vm1263_vm15 = vweird.f32 %v2304_v30  ;;  %v1210_v20 = vor.u32 1.1754944e-38, %v1209_v50 }
 0x322   : > { %v1260_v43 = vsub.f32 1.0, %v1259_v13  ;;  %1343 = vst [vmem:[#allocation2 + $0xc8] sm:$0xff] %v1227_v54  ;;  %v1202_v19 = vadd.f32 %v1668_v61, %v1201_v33  ;;  %v1244_v8 = vmul.f32 %v1672_v14, %v2315_v38  ;;  %vm1264_vm1 = vweird.f32 %v1670_v57 }
 0x323   : > { %v1267_v24 = vand.u32 2147483647, %v2304_v30  ;;  %vm1248_vm2 = vweird.f32 %v2315_v38  ;;  %v1254_v16 = vand.u32 2147483648, %v2315_v38  ;;  %v1270_v60 = vor.u32 1.1754944e-38, %v1269_v63  ;;  %vm1265_vm3 = vmor %vm1263_vm15, %vm1264_vm1 }
 0x324   : > { %v1261_v5 = vmul.f32 %v1670_v57, %v1260_v43  ;;  %v1674_v25 = vpop.eup %1673  ;;  %v1206_v53 = vsel %vm1205_vm0, %v1668_v61, %v1202_v19  ;;  %v1245_v26 = vsub.f32 1.0, %v1244_v8  ;;  %vm1249_vm4 = vweird.f32 %v1672_v14 }
 0x325   : > { %v1211_v55 = vsel %vm1208_vm14, %v1210_v20, %v1206_v53  ;;  %v1304_v48 = vmul.f32 %v1674_v25, %v2333_v1  ;;  %v1252_v36 = vand.u32 2147483647, %v2315_v38  ;;  %vm1268_vm5 = vcmp.eq.f32.partialorder %v1267_v24, 8.507059e+37  ;;  %vm1250_vm6 = vmor %vm1248_vm2, %vm1249_vm4 }
 0x326   : > { %v1262_v3 = vadd.f32 %v1670_v57, %v1261_v5  ;;  %v1212_v45 = vmul.f32 %v1679_v32, %v1211_v55  ;;  %v1246_v56 = vmul.f32 %v1672_v14, %v1245_v26  ;;  %v1314_v42 = vand.u32 2147483648, %v2333_v1 }
 0x327   : > { %v1676_v35 = vpop.eup %1675  ;;  %v1305_v0 = vsub.f32 1.0, %v1304_v48  ;;  %v1255_v44 = vor.u32 1.1754944e-38, %v1254_v16  ;;  %vm1309_vm7 = vweird.f32 %v1674_v25  ;;  %v1312_v23 = vand.u32 2147483647, %v2333_v1 }
 0x328   : > { %v1266_v10 = vsel %vm1265_vm3, %v1670_v57, %v1262_v3  ;;  %1342 = vst [vmem:[#allocation2 + $0xc0] sm:$0xff] %v1212_v45  ;;  %v1247_v28 = vadd.f32 %v1672_v14, %v1246_v56  ;;  %v1289_v27 = vmul.f32 %v1676_v35, %v2339_v12  ;;  %vm1253_vm8 = vcmp.eq.f32.partialorder %v1252_v36, 8.507059e+37 }
 0x329   : > { %v1271_v17 = vsel %vm1268_vm5, %v1270_v60, %v1266_v10  ;;  %v1306_v30 = vmul.f32 %v1674_v25, %v1305_v0  ;;  %vm1308_vm9 = vweird.f32 %v2333_v1  ;;  %v1315_v51 = vor.u32 1.1754944e-38, %v1314_v42 }
 0x32a   : > { %v1272_v47 = vmul.f32 %v1680_v46, %v1271_v17  ;;  %v1251_v40 = vsel %vm1250_vm6, %v1672_v14, %v1247_v28  ;;  %v1290_v49 = vsub.f32 1.0, %v1289_v27  ;;  %v1299_v11 = vand.u32 2147483648, %v2339_v12  ;;  %vm1310_vm10 = vmor %vm1308_vm9, %vm1309_vm7 }
 0x32b   : > { %v1256_v15 = vsel %vm1253_vm8, %v1255_v44, %v1251_v40  ;;  %v1307_v39 = vadd.f32 %v1674_v25, %v1306_v30  ;;  %vm1294_vm11 = vweird.f32 %v1676_v35  ;;  %v1297_v29 = vand.u32 2147483647, %v2339_v12 }
 0x32c   : > { %1346 = vst [vmem:[#allocation2 + $0xe0] sm:$0xff] %v1272_v47  ;;  %v1257_v58 = vmul.f32 %v1681_v52, %v1256_v15  ;;  %v1291_v38 = vmul.f32 %v1676_v35, %v1290_v49  ;;  %vm1313_vm12 = vcmp.eq.f32.partialorder %v1312_v23, 8.507059e+37  ;;  %vm1293_vm13 = vweird.f32 %v2339_v12 }
 0x32d   : > { %v1311_v18 = vsel %vm1310_vm10, %v1674_v25, %v1307_v39  ;;  %vm1295_vm14 = vmor %vm1293_vm13, %vm1294_vm11  ;;  %v1300_v21 = vor.u32 1.1754944e-38, %v1299_v11  ;;  %vm1298_vm15 = vcmp.eq.f32.partialorder %v1297_v29, 8.507059e+37 }
 0x32e   : > { %1345 = vst [vmem:[#allocation2 + $0xd8] sm:$0xff] %v1257_v58  ;;  %v1316_v41 = vsel %vm1313_vm12, %v1315_v51, %v1311_v18  ;;  %v1292_v61 = vadd.f32 %v1676_v35, %v1291_v38 }
 0x32f   : > { %v1317_v1 = vmul.f32 %v1682_v7, %v1316_v41 }
 0x330   : > { %v1296_v4 = vsel %vm1295_vm14, %v1676_v35, %v1292_v61 }
 0x331   : > { %1349 = vst [vmem:[#allocation2 + $0xf8] sm:$0xff] %v1317_v1  ;;  %v1301_v34 = vsel %vm1298_vm15, %v1300_v21, %v1296_v4 }
 0x332   : > { %v1302_v31 = vmul.f32 %v1683_v59, %v1301_v34 }
 0x334   : > { %1348 = vst [vmem:[#allocation2 + $0xf0] sm:$0xff] %v1302_v31 }
 0x335 PF: > { %p1478_p6 = scmp.eq.s32.totalorder %s1752_s10, 2  ;;  %s1728_s19 = smov [#allocation2]  }
 0x336   : > { %s1355_s20 = sshll.u32 %s1728_s19, 4  ;;  %s1357_s23 = sshll.u32 %s2373_s2, 4  ;;  %s1356_s20 = int_to_ptr.vmem [resolvable:$true] %s1355_s20  ;;  %s1358_s23 = int_to_ptr.hbm [resolvable:$true] %s1357_s23 }
 0x337   : > { %s1729_s24 = smov 128   ;;  %s1730_s25 = smov 8  }
 0x338   : > { %1475 = dma.vmem_to_hbm [thread:$0]  (%p1478_p6), %s1356_s20, 4096, %s1358_s23, [#allocation3], %s1729_s24, %s1729_s24, %s1730_s25  }
 0x339   : > { %1717 = dma.done.wait (%p1478_p6), [#allocation3], 4096  }
 0x33a   : > { %1719 = vsyncadd (%p1478_p6), [#allocation3], 4294963200 }
 0x33b PF: > { %s13_s9 = sadd.s32 1, %s1722_s9  }
 0x33c   : > { %p10_p7 = scmp.ge.s32.totalorder %s13_s9, 5  }
 0x33e   :  { %12 = sbr.rel (!%p10_p7) target bundleno = 1 (0x1), region = 66 }
 0x343   :  { %1374 = vsyncpa [#allocation3], 1 }
 0x344   :  { %1376 = vsyncpa [#allocation3 + $0x1], 1 }

</bundles_post_ra>
